<compile_context>
chip_gen: v6e
topology: v6e:2x2x1
jax: 0.10.0
libtpu: 0.0.40
codegen_flags: <defaults>
</compile_context>

<pallas_src>
import functools

import jax
import jax.numpy as jnp
from jax.experimental import pallas as pl
from jax.experimental.pallas import tpu as pltpu


def _round_up(x, m):
    return (x + m - 1) // m * m


_TK_CAP = 16384             # ~4 MiB bf16 wp tile: amortizes ~0.35 us per-step overhead
_VMEM_TARGET = 28 * 2**20   # keep the double-buffered footprint well under v7x's 64 MiB


def _vmem_budget_bytes(B, tk, d_out, n_out):
    """Double-buffered VMEM footprint of all pallas_call operands (bytes)."""
    bf16, f32 = 2, 4
    x_blk = B * tk * bf16                       # (1, B, tk)   bf16
    wp_blk = tk * d_out * bf16                  # (1, tk, Do)  bf16
    bp_blk = d_out * f32                        # (1, 1, Do)   f32
    shared = ((d_out * 1024 + 1024 * 512 + 512 * n_out) * bf16
              + (1024 + 512 + n_out) * f32)     # pre_head weights + biases
    outs = B * (d_out + n_out) * f32            # x_proj + out blocks
    # Pallas double-buffers every operand by default (incl. the constant-index
    # shared weights and the resident output blocks).
    return 2 * (x_blk + wp_blk + bp_blk + shared + outs)


def _choose_tiling(num_features, d_out, n_out, batch_hint=256):
    """Pick (tk, F_pad, kt): near-equal K tiles as large as the VMEM budget allows."""
    f128 = _round_up(num_features, 128)
    cap = _TK_CAP
    while True:
        kt = pl.cdiv(f128, cap)
        tk = _round_up(pl.cdiv(f128, kt), 128)
        if _vmem_budget_bytes(batch_hint, tk, d_out, n_out) <= _VMEM_TARGET or cap <= 512:
            return tk, tk * kt, kt
        cap //= 2


def _con_kernel(x_ref, wp_ref, bp_ref,
                w1_ref, b1_ref, w2_ref, b2_ref, w3_ref, b3_ref,
                x_out_ref, out_ref):
    k = pl.program_id(1)

    @pl.when(k == 0)
    def _():
        # Seed the resident f32 x_proj output block with the projection bias;
        # partial K products accumulate straight into it (no VMEM scratch, no
        # extra full-tile copy in the epilogue).
        x_out_ref[0] = jnp.broadcast_to(bp_ref[0], x_out_ref.shape[1:])

    # Projection partial product for this K tile (bf16 x bf16 -> f32 on the MXU).
    x_out_ref[0] += jnp.dot(x_ref[0], wp_ref[0],
                            preferred_element_type=jnp.float32)

    @pl.when(k == pl.num_programs(1) - 1)
    def _():
        xp = x_out_ref[0]                                   # (B, d_out) f32, bias included

        # Shared pre_head MLP (Dropout == identity in eval mode); bias-add/ReLU in f32.
        h = jnp.maximum(jnp.dot(xp.astype(w1_ref.dtype), w1_ref[...],
                                preferred_element_type=jnp.float32) + b1_ref[...], 0.0)
        h = jnp.maximum(jnp.dot(h.astype(w2_ref.dtype), w2_ref[...],
                                preferred_element_type=jnp.float32) + b2_ref[...], 0.0)
        o = jnp.dot(h.astype(w3_ref.dtype), w3_ref[...],
                    preferred_element_type=jnp.float32) + b3_ref[...]
        out_ref[0] = o.astype(out_ref.dtype)


def transformer_con_fused(x, wp, bp, w1, b1, w2, b2, w3, b3, *, tk):
    """Both branches fused into one pallas_call.

    x  : (2, B, F_pad)  bf16   stacked flattened encoder outputs (zero-padded K)
    wp : (2, F_pad, Do) bf16   per-branch projection weights (zero-padded K)
    bp : (2, 1, Do)     f32    per-branch projection biases
    w1/w2/w3 bf16, b1/b2/b3 f32: shared pre_head parameters.
    Returns (x_proj (2,B,Do) f32, out (2,B,n_output) f32).
    """
    nb, B, F = x.shape
    d_out = wp.shape[2]
    n_out = w3.shape[1]
    assert F % tk == 0
    kt = F // tk

    flops = 2 * nb * B * (F * d_out + d_out * 1024 + 1024 * 512 + 512 * n_out)
    bytes_accessed = (x.size * 2 + wp.size * 2
                      + w1.size * 2 + w2.size * 2 + w3.size * 2
                      + (bp.size + b1.size + b2.size + b3.size) * 4
                      + nb * B * (d_out + n_out) * 4)

    # Explicit, shape-derived VMEM budget (+ headroom for compiler-internal scratch):
    # safe on v7x's 64 MiB physical VMEM, and still overrides v5e's 16 MiB scoped
    # default whenever the larger tiles actually need it.
    vmem_limit = int(_vmem_budget_bytes(B, tk, d_out, n_out) + 8 * 2**20)

    grid_spec = pltpu.PrefetchScalarGridSpec(
        num_scalar_prefetch=0,
        grid=(nb, kt),
        in_specs=[
            # per-branch, K-tiled inputs
            pl.BlockSpec((1, B, tk), lambda br, k: (br, 0, k)),
            pl.BlockSpec((1, tk, d_out), lambda br, k: (br, k, 0)),
            pl.BlockSpec((1, 1, d_out), lambda br, k: (br, 0, 0)),
            # shared pre_head weights: constant block index -> loaded from HBM once,
            # stay resident in VMEM across both branches and all K steps.
            pl.BlockSpec(w1.shape, lambda br, k: (0, 0)),
            pl.BlockSpec(b1.shape, lambda br, k: (0, 0)),
            pl.BlockSpec(w2.shape, lambda br, k: (0, 0)),
            pl.BlockSpec(b2.shape, lambda br, k: (0, 0)),
            pl.BlockSpec(w3.shape, lambda br, k: (0, 0)),
            pl.BlockSpec(b3.shape, lambda br, k: (0, 0)),
        ],
        out_specs=[
            # index_maps ignore k -> blocks stay resident across the whole K axis
            # (x_proj doubles as the f32 accumulator); written back at branch change.
            pl.BlockSpec((1, B, d_out), lambda br, k: (br, 0, 0)),
            pl.BlockSpec((1, B, n_out), lambda br, k: (br, 0, 0)),
        ],
    )

    x_proj, out = pl.pallas_call(
        _con_kernel,
        out_shape=(jax.ShapeDtypeStruct((nb, B, d_out), jnp.float32),
                   jax.ShapeDtypeStruct((nb, B, n_out), jnp.float32)),
        grid_spec=grid_spec,
        compiler_params=pltpu.CompilerParams(
            # branch axis shards across v7x's 2 TensorCores; K axis is a reduction
            # and must stay last (outputs are written only on the last K step).
            dimension_semantics=("parallel", "arbitrary"),
            vmem_limit_bytes=vmem_limit,
        ),
        cost_estimate=pl.CostEstimate(flops=flops, transcendentals=0,
                                      bytes_accessed=bytes_accessed),
    )(x, wp, bp, w1, b1, w2, b2, w3, b3)
    return x_proj, out


def init_linear(key, fan_in, fan_out):
    """Deterministic init matching nn.Linear default uniform bounds (f32 master)."""
    kw, kb = jax.random.split(key)
    bound = 1.0 / jnp.sqrt(float(fan_in))
    w = jax.random.uniform(kw, (fan_in, fan_out), jnp.float32, -bound, bound)
    b = jax.random.uniform(kb, (1, fan_out), jnp.float32, -bound, bound)
    return w, b


class TransformerConPallas:
    """JAX/Pallas port of TransformerCon's own compute (post-encoder)."""

    def __init__(self, num_features_xt, n_output=128, output_dim=128, seed=0):
        self.n_output = n_output
        self.output_dim = output_dim
        self.num_features_xt = num_features_xt
        self.tk, self.f_pad, self.kt = _choose_tiling(num_features_xt,
                                                      output_dim, n_output)

        key = jax.random.PRNGKey(seed)
        k_p1, k_p2, k1, k2, k3 = jax.random.split(key, 5)

        # PyTorch creates a fresh nn.Linear per branch inside forward -> independent
        # projection weights; stack them along a leading branch axis of size 2.
        wp1, bp1 = init_linear(k_p1, num_features_xt, output_dim)
        wp2, bp2 = init_linear(k_p2, num_features_xt, output_dim)
        wp = jnp.stack([wp1, wp2])                     # (2, F, output_dim)
        pad = self.f_pad - num_features_xt
        if pad:
            wp = jnp.pad(wp, ((0, 0), (0, pad), (0, 0)))   # zero-pad K: exact math
        self.wp = wp.astype(jnp.bfloat16)
        self.bp = jnp.stack([bp1, bp2])                # (2, 1, output_dim) f32

        # Shared pre_head parameters (bf16 weights, f32 biases).
        w1, self.b1 = init_linear(k1, output_dim, 1024)
        w2, self.b2 = init_linear(k2, 1024, 512)
        w3, self.b3 = init_linear(k3, 512, n_output)
        self.w1 = w1.astype(jnp.bfloat16)
        self.w2 = w2.astype(jnp.bfloat16)
        self.w3 = w3.astype(jnp.bfloat16)

    @functools.partial(jax.jit, static_argnums=0)
    def __call__(self, enc1_out, enc2_out):
        # (seq, batch, d_model) -> (batch, seq*d_model); matches .transpose(0,1)+reshape.
        # Done under jit so XLA fuses transpose+reshape+stack+pad+bf16-cast into a
        # single copy feeding the kernel.  (If the encoders already produce bf16
        # upstream, this pass reads half the bytes; see review item on x traffic.)
        x1 = jnp.transpose(enc1_out, (1, 0, 2))
        x2 = jnp.transpose(enc2_out, (1, 0, 2))
        B = x1.shape[0]
        x = jnp.stack([x1.reshape(B, -1), x2.reshape(B, -1)])   # (2, B, F)
        pad = self.f_pad - x.shape[-1]
        if pad:
            x = jnp.pad(x, ((0, 0), (0, 0), (0, pad)))          # tiny (< kt*128 cols)
        x = x.astype(jnp.bfloat16)

        x_proj, out = transformer_con_fused(
            x, self.wp, self.bp, self.w1, self.b1, self.w2, self.b2,
            self.w3, self.b3, tk=self.tk)
        return x_proj[0], out[0], x_proj[1], out[1]


if __name__ == "__main__":
    # Small, module-consistent shapes: seq=8, batch=8, d_model=32.
    S, B, D = 8, 8, 32
    key = jax.random.PRNGKey(0)
    k1, k2 = jax.random.split(key)
    enc1_out = jax.random.normal(k1, (S, B, D), jnp.float32)  # transformer1 output
    enc2_out = jax.random.normal(k2, (S, B, D), jnp.float32)  # transformer2 output

    model = TransformerConPallas(num_features_xt=S * D, n_output=128, output_dim=128, seed=0)
    x1, out1, x2, out2 = model(enc1_out, enc2_out)
    jax.block_until_ready((x1, out1, x2, out2))

    # Pure-JAX reference mirroring the kernel's bf16 weight/activation casts.
    def ref_branch(xf, wp_b, bp_b):
        xp = jnp.dot(xf.astype(jnp.bfloat16), wp_b,
                     preferred_element_type=jnp.float32) + bp_b
        h = jnp.maximum(jnp.dot(xp.astype(jnp.bfloat16), model.w1,
                                preferred_element_type=jnp.float32) + model.b1, 0.0)
        h = jnp.maximum(jnp.dot(h.astype(jnp.bfloat16), model.w2,
                                preferred_element_type=jnp.float32) + model.b2, 0.0)
        o = jnp.dot(h.astype(jnp.bfloat16), model.w3,
                    preferred_element_type=jnp.float32) + model.b3
        return xp, o

    F = S * D
    x1f = jnp.transpose(enc1_out, (1, 0, 2)).reshape(B, -1)
    x2f = jnp.transpose(enc2_out, (1, 0, 2)).reshape(B, -1)
    x1_ref, out1_ref = ref_branch(x1f, model.wp[0, :F], model.bp[0])
    x2_ref, out2_ref = ref_branch(x2f, model.wp[1, :F], model.bp[1])

    assert x1.shape == (B, 128) and out1.shape == (B, 128)
    assert x2.shape == (B, 128) and out2.shape == (B, 128)
    assert jnp.allclose(x1, x1_ref, atol=2e-2, rtol=2e-2), "x1 mismatch"
    assert jnp.allclose(out1, out1_ref, atol=2e-2, rtol=2e-2), "out1 mismatch"
    assert jnp.allclose(x2, x2_ref, atol=2e-2, rtol=2e-2), "x2 mismatch"
    assert jnp.allclose(out2, out2_ref, atol=2e-2, rtol=2e-2), "out2 mismatch"
    print("KERNEL_OK")
</pallas_src>

<mosaic_0001>
module attributes {stable_mosaic.version = 11 : i64} {
  func.func @_con_kernel(%arg0: i32, %arg1: i32, %arg2: memref<1x8x256xbf16, #tpu.memory_space<vmem>>, %arg3: memref<1x256x128xbf16, #tpu.memory_space<vmem>>, %arg4: memref<1x1x128xf32, #tpu.memory_space<vmem>>, %arg5: memref<128x1024xbf16, #tpu.memory_space<vmem>>, %arg6: memref<1x1024xf32, #tpu.memory_space<vmem>>, %arg7: memref<1024x512xbf16, #tpu.memory_space<vmem>>, %arg8: memref<1x512xf32, #tpu.memory_space<vmem>>, %arg9: memref<512x128xbf16, #tpu.memory_space<vmem>>, %arg10: memref<1x128xf32, #tpu.memory_space<vmem>>, %arg11: memref<1x8x128xf32, #tpu.memory_space<vmem>>, %arg12: memref<1x8x128xf32, #tpu.memory_space<vmem>>) attributes {dimension_semantics = [#tpu.dimension_semantics<parallel>, #tpu.dimension_semantics<arbitrary>], iteration_bounds = array<i64: 2, 1>, scalar_prefetch = 0 : i64, scratch_operands = 0 : i64, tpu.core_type = #tpu.core_type<tc>, window_params = [{transform_indices = @transform_0, window_bounds = array<i64: 1, 8, 256>}, {transform_indices = @transform_1, window_bounds = array<i64: 1, 256, 128>}, {transform_indices = @transform_2, window_bounds = array<i64: 1, 1, 128>}, {pipeline_mode = #tpu.pipeline_mode<synchronous>, transform_indices = @transform_3, window_bounds = array<i64: 128, 1024>}, {pipeline_mode = #tpu.pipeline_mode<synchronous>, transform_indices = @transform_4, window_bounds = array<i64: 1, 1024>}, {pipeline_mode = #tpu.pipeline_mode<synchronous>, transform_indices = @transform_5, window_bounds = array<i64: 1024, 512>}, {pipeline_mode = #tpu.pipeline_mode<synchronous>, transform_indices = @transform_6, window_bounds = array<i64: 1, 512>}, {pipeline_mode = #tpu.pipeline_mode<synchronous>, transform_indices = @transform_7, window_bounds = array<i64: 512, 128>}, {pipeline_mode = #tpu.pipeline_mode<synchronous>, transform_indices = @transform_8, window_bounds = array<i64: 1, 128>}, {transform_indices = @transform_9, window_bounds = array<i64: 1, 8, 128>}, {transform_indices = @transform_10, window_bounds = array<i64: 1, 8, 128>}]} {
    %c0_i32 = arith.constant 0 : i32
    %0 = arith.cmpi eq, %arg1, %c0_i32 : i32
    %1 = arith.extui %0 : i1 to i32
    %c0_i32_0 = arith.constant 0 : i32
    %2 = arith.cmpi ne, %1, %c0_i32_0 : i32
    scf.if %2 {
      %c0_14 = arith.constant 0 : index
      %c0_15 = arith.constant 0 : index
      %c0_16 = arith.constant 0 : index
      %17 = vector.load %arg4[%c0_14, %c0_15, %c0_16] : memref<1x1x128xf32, #tpu.memory_space<vmem>>, vector<1x1x128xf32>
      %18 = vector.shape_cast %17 : vector<1x1x128xf32> to vector<1x128xf32>
      %19 = vector.shape_cast %18 : vector<1x128xf32> to vector<1x128xf32>
      %20 = vector.broadcast %19 : vector<1x128xf32> to vector<8x128xf32>
      %c0_17 = arith.constant 0 : index
      %c0_18 = arith.constant 0 : index
      %c0_19 = arith.constant 0 : index
      %21 = vector.load %arg11[%c0_17, %c0_18, %c0_19] : memref<1x8x128xf32, #tpu.memory_space<vmem>>, vector<1x8x128xf32>
      %22 = vector.shape_cast %21 : vector<1x8x128xf32> to vector<8x128xf32>
      %23 = vector.shape_cast %20 : vector<8x128xf32> to vector<1x8x128xf32>
      tpu.vector_store %arg11[%c0_17, %c0_18, %c0_19], %23 {strides = array<i32>} : memref<1x8x128xf32, #tpu.memory_space<vmem>>, vector<1x8x128xf32>,
    } else {
    }
    %c0 = arith.constant 0 : index
    %c0_1 = arith.constant 0 : index
    %c0_2 = arith.constant 0 : index
    %3 = vector.load %arg11[%c0, %c0_1, %c0_2] : memref<1x8x128xf32, #tpu.memory_space<vmem>>, vector<1x8x128xf32>
    %4 = vector.shape_cast %3 : vector<1x8x128xf32> to vector<8x128xf32>
    %c0_3 = arith.constant 0 : index
    %c0_4 = arith.constant 0 : index
    %c0_5 = arith.constant 0 : index
    %5 = vector.load %arg2[%c0_3, %c0_4, %c0_5] : memref<1x8x256xbf16, #tpu.memory_space<vmem>>, vector<1x8x256xbf16>
    %6 = vector.shape_cast %5 : vector<1x8x256xbf16> to vector<8x256xbf16>
    %c0_6 = arith.constant 0 : index
    %c0_7 = arith.constant 0 : index
    %c0_8 = arith.constant 0 : index
    %7 = vector.load %arg3[%c0_6, %c0_7, %c0_8] : memref<1x256x128xbf16, #tpu.memory_space<vmem>>, vector<1x256x128xbf16>
    %8 = vector.shape_cast %7 : vector<1x256x128xbf16> to vector<256x128xbf16>
    %cst = arith.constant dense<0.000000e+00> : vector<8x128xf32>
    %9 = tpu.matmul %6, %8, %cst {dimension_numbers = #tpu.dot_dimension_numbers<[1], [0], [0], [1], [0, 0, 1, 1], [], []>} : vector<8x256xbf16>, vector<256x128xbf16>, vector<8x128xf32> -> vector<8x128xf32>
    %10 = arith.addf %4, %9 : vector<8x128xf32>
    %c0_9 = arith.constant 0 : index
    %c0_10 = arith.constant 0 : index
    %c0_11 = arith.constant 0 : index
    %11 = vector.load %arg11[%c0_9, %c0_10, %c0_11] : memref<1x8x128xf32, #tpu.memory_space<vmem>>, vector<1x8x128xf32>
    %12 = vector.shape_cast %11 : vector<1x8x128xf32> to vector<8x128xf32>
    %13 = vector.shape_cast %10 : vector<8x128xf32> to vector<1x8x128xf32>
    tpu.vector_store %arg11[%c0_9, %c0_10, %c0_11], %13 {strides = array<i32>} : memref<1x8x128xf32, #tpu.memory_space<vmem>>, vector<1x8x128xf32>,
    %c0_i32_12 = arith.constant 0 : i32
    %14 = arith.cmpi eq, %arg1, %c0_i32_12 : i32
    %15 = arith.extui %14 : i1 to i32
    %c0_i32_13 = arith.constant 0 : i32
    %16 = arith.cmpi ne, %15, %c0_i32_13 : i32
    scf.if %16 {
      %c0_14 = arith.constant 0 : index
      %c0_15 = arith.constant 0 : index
      %c0_16 = arith.constant 0 : index
      %17 = vector.load %arg11[%c0_14, %c0_15, %c0_16] : memref<1x8x128xf32, #tpu.memory_space<vmem>>, vector<1x8x128xf32>
      %18 = vector.shape_cast %17 : vector<1x8x128xf32> to vector<8x128xf32>
      %19 = arith.truncf %18 : vector<8x128xf32> to vector<8x128xbf16>
      %c0_17 = arith.constant 0 : index
      %c0_18 = arith.constant 0 : index
      %20 = vector.load %arg5[%c0_17, %c0_18] : memref<128x1024xbf16, #tpu.memory_space<vmem>>, vector<128x1024xbf16>
      %cst_19 = arith.constant dense<0.000000e+00> : vector<8x1024xf32>
      %21 = tpu.matmul %19, %20, %cst_19 {dimension_numbers = #tpu.dot_dimension_numbers<[1], [0], [0], [1], [0, 0, 1, 1], [], []>} : vector<8x128xbf16>, vector<128x1024xbf16>, vector<8x1024xf32> -> vector<8x1024xf32>
      %c0_20 = arith.constant 0 : index
      %c0_21 = arith.constant 0 : index
      %22 = vector.load %arg6[%c0_20, %c0_21] : memref<1x1024xf32, #tpu.memory_space<vmem>>, vector<1x1024xf32>
      %23 = vector.broadcast %22 : vector<1x1024xf32> to vector<8x1024xf32>
      %24 = arith.addf %21, %23 : vector<8x1024xf32>
      %cst_22 = arith.constant 0.000000e+00 : f32
      %25 = vector.broadcast %cst_22 : f32 to vector<8x1024xf32>
      %26 = arith.maximumf %24, %25 : vector<8x1024xf32>
      %27 = arith.truncf %26 : vector<8x1024xf32> to vector<8x1024xbf16>
      %c0_23 = arith.constant 0 : index
      %c0_24 = arith.constant 0 : index
      %28 = vector.load %arg7[%c0_23, %c0_24] : memref<1024x512xbf16, #tpu.memory_space<vmem>>, vector<1024x512xbf16>
      %cst_25 = arith.constant dense<0.000000e+00> : vector<8x512xf32>
      %29 = tpu.matmul %27, %28, %cst_25 {dimension_numbers = #tpu.dot_dimension_numbers<[1], [0], [0], [1], [0, 0, 1, 1], [], []>} : vector<8x1024xbf16>, vector<1024x512xbf16>, vector<8x512xf32> -> vector<8x512xf32>
      %c0_26 = arith.constant 0 : index
      %c0_27 = arith.constant 0 : index
      %30 = vector.load %arg8[%c0_26, %c0_27] : memref<1x512xf32, #tpu.memory_space<vmem>>, vector<1x512xf32>
      %31 = vector.broadcast %30 : vector<1x512xf32> to vector<8x512xf32>
      %32 = arith.addf %29, %31 : vector<8x512xf32>
      %cst_28 = arith.constant 0.000000e+00 : f32
      %33 = vector.broadcast %cst_28 : f32 to vector<8x512xf32>
      %34 = arith.maximumf %32, %33 : vector<8x512xf32>
      %35 = arith.truncf %34 : vector<8x512xf32> to vector<8x512xbf16>
      %c0_29 = arith.constant 0 : index
      %c0_30 = arith.constant 0 : index
      %36 = vector.load %arg9[%c0_29, %c0_30] : memref<512x128xbf16, #tpu.memory_space<vmem>>, vector<512x128xbf16>
      %cst_31 = arith.constant dense<0.000000e+00> : vector<8x128xf32>
      %37 = tpu.matmul %35, %36, %cst_31 {dimension_numbers = #tpu.dot_dimension_numbers<[1], [0], [0], [1], [0, 0, 1, 1], [], []>} : vector<8x512xbf16>, vector<512x128xbf16>, vector<8x128xf32> -> vector<8x128xf32>
      %c0_32 = arith.constant 0 : index
      %c0_33 = arith.constant 0 : index
      %38 = vector.load %arg10[%c0_32, %c0_33] : memref<1x128xf32, #tpu.memory_space<vmem>>, vector<1x128xf32>
      %39 = vector.broadcast %38 : vector<1x128xf32> to vector<8x128xf32>
      %40 = arith.addf %37, %39 : vector<8x128xf32>
      %c0_34 = arith.constant 0 : index
      %c0_35 = arith.constant 0 : index
      %c0_36 = arith.constant 0 : index
      %41 = vector.load %arg12[%c0_34, %c0_35, %c0_36] : memref<1x8x128xf32, #tpu.memory_space<vmem>>, vector<1x8x128xf32>
      %42 = vector.shape_cast %41 : vector<1x8x128xf32> to vector<8x128xf32>
      %43 = vector.shape_cast %40 : vector<8x128xf32> to vector<1x8x128xf32>
      tpu.vector_store %arg12[%c0_34, %c0_35, %c0_36], %43 {strides = array<i32>} : memref<1x8x128xf32, #tpu.memory_space<vmem>>, vector<1x8x128xf32>,
    } else {
    }
    return
  }
  func.func @transform_0(%arg0: i32, %arg1: i32) -> (i32, i32, i32) {
    %c0_i32 = arith.constant 0 : i32
    %c0_i32_0 = arith.constant 0 : i32
    return %arg0, %c0_i32, %arg1 : i32, i32, i32
  }
  func.func @transform_1(%arg0: i32, %arg1: i32) -> (i32, i32, i32) {
    %c0_i32 = arith.constant 0 : i32
    %c0_i32_0 = arith.constant 0 : i32
    return %arg0, %arg1, %c0_i32 : i32, i32, i32
  }
  func.func @transform_2(%arg0: i32, %arg1: i32) -> (i32, i32, i32) {
    %c0_i32 = arith.constant 0 : i32
    %c0_i32_0 = arith.constant 0 : i32
    %c0_i32_1 = arith.constant 0 : i32
    return %arg0, %c0_i32, %c0_i32_0 : i32, i32, i32
  }
  func.func @transform_3(%arg0: i32, %arg1: i32) -> (i32, i32) {
    %c0_i32 = arith.constant 0 : i32
    %c0_i32_0 = arith.constant 0 : i32
    %c0_i32_1 = arith.constant 0 : i32
    return %c0_i32, %c0_i32_0 : i32, i32
  }
  func.func @transform_4(%arg0: i32, %arg1: i32) -> (i32, i32) {
    %c0_i32 = arith.constant 0 : i32
    %c0_i32_0 = arith.constant 0 : i32
    %c0_i32_1 = arith.constant 0 : i32
    return %c0_i32, %c0_i32_0 : i32, i32
  }
  func.func @transform_5(%arg0: i32, %arg1: i32) -> (i32, i32) {
    %c0_i32 = arith.constant 0 : i32
    %c0_i32_0 = arith.constant 0 : i32
    %c0_i32_1 = arith.constant 0 : i32
    return %c0_i32, %c0_i32_0 : i32, i32
  }
  func.func @transform_6(%arg0: i32, %arg1: i32) -> (i32, i32) {
    %c0_i32 = arith.constant 0 : i32
    %c0_i32_0 = arith.constant 0 : i32
    %c0_i32_1 = arith.constant 0 : i32
    return %c0_i32, %c0_i32_0 : i32, i32
  }
  func.func @transform_7(%arg0: i32, %arg1: i32) -> (i32, i32) {
    %c0_i32 = arith.constant 0 : i32
    %c0_i32_0 = arith.constant 0 : i32
    %c0_i32_1 = arith.constant 0 : i32
    return %c0_i32, %c0_i32_0 : i32, i32
  }
  func.func @transform_8(%arg0: i32, %arg1: i32) -> (i32, i32) {
    %c0_i32 = arith.constant 0 : i32
    %c0_i32_0 = arith.constant 0 : i32
    %c0_i32_1 = arith.constant 0 : i32
    return %c0_i32, %c0_i32_0 : i32, i32
  }
  func.func @transform_9(%arg0: i32, %arg1: i32) -> (i32, i32, i32) {
    %c0_i32 = arith.constant 0 : i32
    %c0_i32_0 = arith.constant 0 : i32
    %c0_i32_1 = arith.constant 0 : i32
    return %arg0, %c0_i32, %c0_i32_0 : i32, i32, i32
  }
  func.func @transform_10(%arg0: i32, %arg1: i32) -> (i32, i32, i32) {
    %c0_i32 = arith.constant 0 : i32
    %c0_i32_0 = arith.constant 0 : i32
    %c0_i32_1 = arith.constant 0 : i32
    return %arg0, %c0_i32, %c0_i32_0 : i32, i32, i32
  }
}

</mosaic_0001>

<bundles_post_ra>
// kernel: a_call__.1
= control target key start
LH: loop header
LB: loop body
LE: loop exit
PB: predicated region body
PF: predicated region fallthrough
CT: control target
= control target key end

     0   :  { %s5211_s0 = inlined_call_operand.vmem [shape: bf16[2,8,256], index: 0, kind: input, shape index: {}]   ;;  %s5212_s1 = inlined_call_operand.hbm [shape: bf16[2,256,128], index: 1, kind: input, shape index: {}]   ;;  %s5213_s2 = inlined_call_operand.vmem [shape: f32[2,1,128], index: 2, kind: input, shape index: {}]   ;;  %s5214_s3 = inlined_call_operand.hbm [shape: bf16[128,1024], index: 3, kind: input, shape index: {}]   ;;  %s5215_s4 = inlined_call_operand.vmem [shape: f32[1,1024], index: 4, kind: input, shape index: {}]   ;;  %s5216_s5 = inlined_call_operand.hbm [shape: bf16[1024,512], index: 5, kind: input, shape index: {}]   ;;  %s5217_s6 = inlined_call_operand.vmem [shape: f32[1,512], index: 6, kind: input, shape index: {}]   ;;  %s5218_s7 = inlined_call_operand.vmem [shape: bf16[512,128], index: 7, kind: input, shape index: {}]   ;;  %s5219_s8 = inlined_call_operand.vmem [shape: f32[1,128], index: 8, kind: input, shape index: {}]   ;;  %s5220_s9 = inlined_call_operand.vmem [shape: f32[2,8,128], index: 9, kind: output, shape index: {0}]   ;;  %s5221_s10 = inlined_call_operand.vmem [shape: f32[2,8,128], index: 10, kind: output, shape index: {1}]  }
   0x1   :  { %5225 = sst [smem:[#allocation10_spill]] %s5214_s3 }
   0x2   :  { %5226 = sst [smem:[#allocation11_spill]] %s5216_s5 }
   0x3   :  { %16 = vsyncpa [#allocation3], 0 }
   0x4   :  { %18 = vsyncpa [#allocation3 + $0x1], 0 }
   0x5   :  { %19 = vsyncpa [#allocation5], 0  ;;  %s4856_s13 = smov 0   ;;  %s4858_s14 = smov 0  }
   0x6   :  { %s4860_s15 = smov 0   ;;  %s4862_s16 = smov 0  }
   0x7   :  { %s4864_s17 = smov 0   ;;  %s4866_s18 = smov 0  }
   0x8 LB: > { %s3679_s19 = sadd.s32 4294967295, %s4789_s18   ;;  %p87_p0 = scmp.ne.s32.totalorder %s4773_s14, %s4769_s13  ;;  %s4789_s18 = sphi %s4866_s18, %s25_s18   ;;  %s4785_s17 = sphi %s4864_s17, %s5242_s17   ;;  %s4781_s16 = sphi %s4862_s16, %s5241_s16   ;;  %s4777_s15 = sphi %s4860_s15, %s5240_s15   ;;  %s4773_s14 = sphi %s4858_s14, %s5239_s14   ;;  %s4769_s13 = sphi %s4856_s13, %s5238_s13  }
   0x9   : > { %p4886_p1 = scmp.eq.s32.totalorder %s3679_s19, 0  ;;  %p3681_p2 = scmp.ge.s32.totalorder %s4789_s18, 1 }
   0xa   : > { %p302_p3 = scmp.lt.s32.totalorder %s4789_s18, 3  ;;  %s4791_s23 = smov [#allocation4]  }
   0xb   : > { %s5227_s20 = scalar_select %p4886_p1, 1, 0 }
   0xc   : > { %p4894_p4 = por %p4886_p1, %p87_p0  ;;  %p4898_p5 = pnand %p3681_p2, %p302_p3 }
   0xd   : > { %s314_s24 = sshll.u32 %s4791_s23, 4  ;;  %s4792_s26 = smov [#allocation6]   ;;  %s315_s24 = int_to_ptr.vmem [resolvable:$true] %s314_s24 }
   0xe   : > { %p4148_p6 = pneg %p4898_p5  ;;  %s330_s27 = sshll.u32 %s4792_s26, 4  ;;  %s331_s27 = int_to_ptr.vmem [resolvable:$true] %s330_s27 }
   0xf   : > { %s4666_s28 = scalar_lea.vmem %s315_s24, 8192  ;;  %p4674_p12 = scmp.lt.s32.totalorder %s315_s24, %s315_s24 }
  0x10   : > { %p4906_p7 = pnand %p4148_p6, %p4886_p1  ;;  %p4667_p9 = scmp.ne.s32.totalorder %s315_s24, %s4666_s28 }
  0x11   : > { %p4675_p13 = scmp.lt.s32.totalorder %s4666_s28, %s4666_s28 }
  0x12   : > { %p4657_p8 = pneg %p4906_p7 }
  0x13   : > { %p4676_p0 = por %p4675_p13, %p4674_p12 }
  0x14   : > { %p4669_p10 = pnand %p4667_p9, %p4657_p8 }
  0x16   : > { %p4670_p11 = pneg %p4669_p10 }
  0x18   : > { %p4677_p2 = pnand %p4676_p0, %p4670_p11 }
  0x1a   : > { %4680 = shalt.err (!%p4677_p2)
}
  0x1b   : > { %s4793_s29 = smov 512   ;;  %s4794_s30 = smov 32  }
  0x1c   : > { %s5231_s3 = sld [smem:[#allocation10_spill]]  ;;  %s4692_s13 = scalar_lea.vmem %s331_s27, 32768 }
  0x1d   : > { %p4693_p3 = scmp.ne.s32.totalorder %s331_s27, %s4692_s13  ;;  %p4700_p10 = scmp.lt.s32.totalorder %s331_s27, %s331_s27 }
  0x1e   : > { %p4701_p1 = scmp.lt.s32.totalorder %s4692_s13, %s4692_s13 }
  0x1f   : > { %p4695_p6 = pnand %p4693_p3, %p4657_p8 }
  0x20   : > { %p4702_p12 = por %p4701_p1, %p4700_p10 }
  0x21   : > { %p4696_p9 = pneg %p4695_p6 }
  0x22   : > { %4151 = dma.hbm_to_vmem [thread:$0]  (!%p4906_p7), %s5231_s3, 8192, %s315_s24, [#allocation5], %s4793_s29, %s4793_s29, %s4794_s30  }
  0x23   : > { %p4703_p11 = pnand %p4702_p12, %p4696_p9 }
  0x25   : > { %4706 = shalt.err (!%p4703_p11)
}
  0x26   : > { %s4795_s19 = smov 256   ;;  %s4796_s23 = smov 16  }
  0x27   : > { %s5232_s5 = sld [smem:[#allocation11_spill]]  ;;  %s37_s28 = sadd.s32 1, %s4785_s17 }
  0x28   : > { %s74_s29 = sadd.s32 1, %s4777_s15  ;;  %p39_p1 = scmp.ge.s32.totalorder %s37_s28, 2 }
  0x29   : > { %p81_p8 = scmp.ne.s32.totalorder %s4777_s15, %s4773_s14  ;;  %p82_p13 = scmp.eq.s32.totalorder %s4789_s18, 0 }
  0x2a   : > { %p4161_p0 = scmp.lt.s32.totalorder %s4789_s18, 2  ;;  %s5244_s28 = smov (%p39_p1, %s37_s28), 0 }
  0x2b   : > { %5233 = sst [smem:[#allocation9_spill]] %s5244_s28  ;;  %p83_p2 = por %p82_p13, %p81_p8 }
  0x2c   : > { %s366_s30 = sand.u32 1, %s4777_s15   ;;  %s69_s11 = ssub.s32 %s4785_s17, %s5244_s28 }
  0x2d   : > { %4154 = dma.hbm_to_vmem [thread:$0]  (!%p4906_p7), %s5232_s5, 32768, %s331_s27, [#allocation5], %s4795_s19, %s4795_s19, %s4796_s23  }
  0x2e   : > { %p72_p3 = scmp.eq.s32.totalorder %s69_s11, 0  ;;  %s3685_s12 = sshll.u32 %s366_s30, 7 }
  0x2f   : > { %s4070_s25 = sshll.u32 %s4785_s17, 11  ;;  %s370_s23 = scalar_lea.vmem [#allocation2], %s3685_s12 }
  0x30   : > { %s4941_s13 = scalar_select %p72_p3, %s4777_s15, %s74_s29  }
  0x31   : > { %s378_s19 = scalar_lea.hbm %s5212_s1, %s4070_s25  ;;  %s379_s26 = sshll.u32 %s370_s23, 4  ;;  %s380_s26 = int_to_ptr.vmem [resolvable:$true] %s379_s26 }
  0x32   : > { %p4948_p7 = pnand %p4161_p0, %p83_p2  ;;  %s367_s5 = scalar_lea.sflag [#allocation3], %s366_s30 }
  0x33   : > { %s4720_s11 = scalar_lea.vmem %s380_s26, 2048  ;;  %s4797_s29 = smov [#allocation2]  }
  0x34   : > { %p4709_p6 = pneg %p4948_p7  ;;  %p4721_p9 = scmp.ne.s32.totalorder %s380_s26, %s4720_s11 }
  0x35   : > { %s4725_s28 = sshll.u32 %s4797_s29, 4  ;;  %s4726_s28 = int_to_ptr.vmem [resolvable:$false] %s4725_s28 }
  0x36   : > { %p4723_p10 = pnand %p4721_p9, %p4709_p6  ;;  %s4727_s25 = scalar_lea.vmem %s4726_s28, 4096 }
  0x37   : > { %p4728_p11 = scmp.lt.s32.totalorder %s380_s26, %s4726_s28  ;;  %p4729_p1 = scmp.lt.s32.totalorder %s4727_s25, %s4720_s11 }
  0x38   : > { %p4724_p12 = pneg %p4723_p10 }
  0x39   : > { %p4730_p8 = por %p4729_p1, %p4728_p11 }
  0x3b   : > { %p4731_p13 = pnand %p4730_p8, %p4724_p12 }
  0x3d   : > { %4734 = shalt.err (!%p4731_p13)
}
  0x3e   : > { %s4798_s12 = smov 64   ;;  %s4799_s24 = smov 4  }
  0x3f   : > { %4158 = dma.hbm_to_vmem [thread:$0]  (!%p4948_p7), %s378_s19, 2048, %s380_s26, %s367_s5, %s4798_s12, %s4798_s12, %s4799_s24  }
  0x40   : > { %397 = sbr.rel (%p4898_p5) target bundleno = 1105 (0x451), region = 56  ;;  %s399_s30 = sand.u32 (!%p4898_p5), 1, %s4773_s14  }
  0x41   : > { %s3689_s27 = sshll.u32 (!%p4898_p5), %s399_s30, 7  ;;  %s400_s23 = scalar_lea.sflag (!%p4898_p5), [#allocation3], %s399_s30 }
  0x42   : > { %s4959_s29 = scalar_lea.vmem (!%p4898_p5), [#allocation2], %s3689_s27 }
  0x45   : > { %4760 = dma.done.wait (%p4894_p4), %s400_s23, 2048  }
  0x46   : > { %4762 = vsyncadd (%p4894_p4), %s400_s23, 4294965248  ;;  %p5235_p0 = scmp.ne.s32.totalorder %s5227_s20, 0 }
  0x48   : > { %4764 = dma.done.wait (%p5235_p0), [#allocation5], 40960  }
  0x49   : > { %4766 = vsyncadd (%p5235_p0), [#allocation5], 4294926336  ;;  %v4221_v0 = vld [vmem:[%s4959_s29 + $0x78] sm:$0xff]   ;;  %v4223_v2 = vld [vmem:[%s4959_s29 + $0x70] sm:$0xff]   ;;  %p464_p4 = scmp.lt.s32.totalorder %s4781_s16, 1 }
  0x4a   : > { %v4222_v1 = vld [vmem:[%s4959_s29 + $0x38] sm:$0xff]   ;;  %4072 = vmatprep.subr.bf16.mxu0 %v4221_v0  ;;  %v4224_v3 = vld [vmem:[%s4959_s29 + $0x30] sm:$0xff]   ;;  %v4225_v4 = vld [vmem:[%s4959_s29 + $0x68] sm:$0xff]  }
  0x4b   : > { %4073 = vmatpush3.bf16.msra.mxu0 %v4222_v1  ;;  %s5246_s16 = smov (!%p464_p4, %s4781_s16), 1  ;;  %v4226_v5 = vld [vmem:[%s4959_s29 + $0x28] sm:$0xff]   ;;  %v4227_v6 = vld [vmem:[%s4959_s29 + $0x60] sm:$0xff]   ;;  %v4229_v8 = vld [vmem:[%s4959_s29 + $0x58] sm:$0xff]  }
  0x4c   : > { %4074 = vmatprep.subr.bf16.mxu0 %v4223_v2  ;;  %s4981_s3 = sshll.u32 %s5246_s16, 3  ;;  %v4228_v7 = vld [vmem:[%s4959_s29 + $0x20] sm:$0xff]   ;;  %v4230_v9 = vld [vmem:[%s4959_s29 + $0x18] sm:$0xff]   ;;  %v4231_v10 = vld [vmem:[%s4959_s29 + $0x50] sm:$0xff]   ;;  %s476_s19 = scalar_lea.vmem %s5213_s2, %s5246_s16 }
  0x4d   : > { %s471_s21 = scalar_lea.vmem %s5211_s0, %s4981_s3  ;;  %v738_v12 = vld [vmem:[#allocation4 + $0x1c0] sm:$0xff]  ;;  %v4232_v19 = vld [vmem:[%s4959_s29 + $0x10] sm:$0xff]   ;;  %v4233_v23 = vld [vmem:[%s4959_s29 + $0x48] sm:$0xff]   ;;  %s480_s25 = scalar_lea.vmem %s5220_s9, %s4981_s3 }
  0x4e   : > { %v499_v11 = vld [vmem:[%s471_s21] sm:$0xff]  ;;  %v4234_v24 = vld [vmem:[%s4959_s29 + $0x8] sm:$0xff]   ;;  %s484_s20 = scalar_lea.vmem %s5221_s10, %s4981_s3 }
  0x4f   : > { %4075 = vmatpush3.bf16.msra.mxu0 %v4224_v3  ;;  %v3698_v13 = vcombine.high %v499_v11, %v499_v11  ;;  %v742_v14 = vld [vmem:[#allocation4 + $0x1e0] sm:$0xff]  ;;  %v739_v30 = vld [vmem:[#allocation4 + $0x1c8] sm:$0xff]  ;;  %v3697_v39 = vcombine.low %v499_v11, %v499_v11 }
  0x50   : > { %4076 = vmatprep.subr.bf16.mxu0 %v4225_v4  ;;  %v3772_v15 = vcombine.high %v738_v12, %v742_v14  ;;  %v3771_v16 = vcombine.low %v738_v12, %v742_v14  ;;  %v730_v17 = vld [vmem:[#allocation4 + $0x180] sm:$0xff]  ;;  %v743_v31 = vld [vmem:[#allocation4 + $0x1e8] sm:$0xff] }
  0x51   : > { %v734_v18 = vld [vmem:[#allocation4 + $0x1a0] sm:$0xff]  ;;  %667 = vmatprep.mubr.bf16.mxu0 %v3698_v13  ;;  %v731_v35 = vld [vmem:[#allocation4 + $0x188] sm:$0xff]  ;;  %v3774_v37 = vcombine.high %v739_v30, %v743_v31  ;;  %v3773_v40 = vcombine.low %v739_v30, %v743_v31 }
  0x52   : > { %v3764_v20 = vcombine.high %v730_v17, %v734_v18  ;;  %v722_v21 = vld [vmem:[#allocation4 + $0x140] sm:$0xff]  ;;  %1108 = vmatprep.subr.bf16.mxu1 %v3772_v15  ;;  %v3763_v25 = vcombine.low %v730_v17, %v734_v18  ;;  %v735_v36 = vld [vmem:[#allocation4 + $0x1a8] sm:$0xff] }
  0x53   : > { %4077 = vmatpush3.bf16.msra.mxu0 %v4226_v5  ;;  %v726_v22 = vld [vmem:[#allocation4 + $0x160] sm:$0xff]  ;;  %1109 = vmatpush1.bf16.msra.mxu1 %v3771_v16  ;;  %v723_v41 = vld [vmem:[#allocation4 + $0x148] sm:$0xff]  ;;  %v3766_v43 = vcombine.high %v731_v35, %v735_v36  ;;  %v3765_v44 = vcombine.low %v731_v35, %v735_v36  ;;  %v733_v35 = vld [vmem:[#allocation4 + $0x198] sm:$0xff] }
  0x54   : > { %4078 = vmatprep.subr.bf16.mxu0 %v4227_v6  ;;  %v714_v26 = vld [vmem:[#allocation4 + $0x100] sm:$0xff]  ;;  %1110 = vmatprep.subr.bf16.mxu1 %v3764_v20  ;;  %v3756_v29 = vcombine.high %v722_v21, %v726_v22  ;;  %v3755_v33 = vcombine.low %v722_v21, %v726_v22  ;;  %v727_v42 = vld [vmem:[#allocation4 + $0x168] sm:$0xff]  ;;  %v744_v20 = vld [vmem:[#allocation4 + $0x1f0] sm:$0xff] }
  0x55   : > { %v718_v27 = vld [vmem:[#allocation4 + $0x120] sm:$0xff]  ;;  %v715_v45 = vld [vmem:[#allocation4 + $0x108] sm:$0xff]  ;;  %v3758_v47 = vcombine.high %v723_v41, %v727_v42  ;;  %v3757_v48 = vcombine.low %v723_v41, %v727_v42  ;;  %v741_v21 = vld [vmem:[#allocation4 + $0x1d8] sm:$0xff] }
  0x56   : > { %v4235_v28 = vld [vmem:[%s4959_s29 + $0x40] sm:$0xff]   ;;  %v3748_v34 = vcombine.high %v714_v26, %v718_v27  ;;  %v3747_v38 = vcombine.low %v714_v26, %v718_v27  ;;  %v719_v46 = vld [vmem:[#allocation4 + $0x128] sm:$0xff]  ;;  %v4800_v27 = vmov 0   ;;  %v737_v36 = vld [vmem:[#allocation4 + $0x1b8] sm:$0xff] }
  0x57   : > { %4079 = vmatpush3.bf16.msra.mxu0 %v4228_v7  ;;  %v4236_v32 = vld [vmem:[%s4959_s29] sm:$0xff]   ;;  %1111 = vmatpush1.bf16.msra.mxu1 %v3763_v25  ;;  %v3750_v49 = vcombine.high %v715_v45, %v719_v46  ;;  %v3749_v50 = vcombine.low %v715_v45, %v719_v46  ;;  %v707_v53 = vld [vmem:[#allocation4 + $0xc8] sm:$0xff]  ;;  %v3770_v41 = vcombine.high %v733_v35, %v737_v36  ;;  %v724_v42 = vld [vmem:[#allocation4 + $0x150] sm:$0xff] }
  0x58   : > { %4080 = vmatprep.subr.bf16.mxu0 %v4229_v8  ;;  %1112 = vmatprep.subr.bf16.mxu1 %v3756_v29  ;;  %v706_v51 = vld [vmem:[#allocation4 + $0xc0] sm:$0xff]  ;;  %v711_v55 = vld [vmem:[#allocation4 + $0xe8] sm:$0xff]  ;;  %v729_v45 = vld [vmem:[#allocation4 + $0x178] sm:$0xff] }
  0x59   : > { %v710_v52 = vld [vmem:[#allocation4 + $0xe0] sm:$0xff]  ;;  %v3741_v56 = vcombine.low %v707_v53, %v711_v55  ;;  %v3742_v57 = vcombine.high %v707_v53, %v711_v55  ;;  %v699_v61 = vld [vmem:[#allocation4 + $0x88] sm:$0xff]  ;;  %1140 = vmatprep.mubr.bf16.mxu1 %v4800_v27  ;;  %v721_v53 = vld [vmem:[#allocation4 + $0x138] sm:$0xff] }
  0x5a   : > { %v3740_v54 = vcombine.high %v706_v51, %v710_v52  ;;  %v3739_v58 = vcombine.low %v706_v51, %v710_v52  ;;  %v698_v59 = vld [vmem:[#allocation4 + $0x80] sm:$0xff]  ;;  %v703_v63 = vld [vmem:[#allocation4 + $0xa8] sm:$0xff]  ;;  %v720_v51 = vld [vmem:[#allocation4 + $0x130] sm:$0xff] }
  0x5b   : > { %4081 = vmatpush3.bf16.msra.mxu0 %v4230_v9  ;;  %1113 = vmatpush1.bf16.msra.mxu1 %v3755_v33  ;;  %v702_v60 = vld [vmem:[#allocation4 + $0xa0] sm:$0xff]  ;;  %v3733_v0 = vcombine.low %v699_v61, %v703_v63  ;;  %v3734_v1 = vcombine.high %v699_v61, %v703_v63  ;;  %v691_v5 = vld [vmem:[#allocation4 + $0x48] sm:$0xff]  ;;  %v717_v52 = vld [vmem:[#allocation4 + $0x118] sm:$0xff] }
  0x5c   : > { %4082 = vmatprep.subr.bf16.mxu0 %v4231_v10  ;;  %1114 = vmatprep.subr.bf16.mxu1 %v3748_v34  ;;  %v3732_v62 = vcombine.high %v698_v59, %v702_v60  ;;  %v3731_v2 = vcombine.low %v698_v59, %v702_v60  ;;  %v690_v3 = vld [vmem:[#allocation4 + $0x40] sm:$0xff]  ;;  %v695_v7 = vld [vmem:[#allocation4 + $0x68] sm:$0xff]  ;;  %v736_v34 = vld [vmem:[#allocation4 + $0x1b0] sm:$0xff]  ;;  %v3753_v63 = vcombine.low %v717_v52, %v721_v53 }
  0x5d   : > { %v694_v4 = vld [vmem:[#allocation4 + $0x60] sm:$0xff]  ;;  %v3725_v8 = vcombine.low %v691_v5, %v695_v7  ;;  %v3726_v9 = vcombine.high %v691_v5, %v695_v7  ;;  %v683_v13 = vld [vmem:[#allocation4 + $0x8] sm:$0xff]  ;;  %v712_v59 = vld [vmem:[#allocation4 + $0xf0] sm:$0xff] }
  0x5e   : > { %v3724_v6 = vcombine.high %v690_v3, %v694_v4  ;;  %v3723_v10 = vcombine.low %v690_v3, %v694_v4  ;;  %v682_v11 = vld [vmem:[#allocation4] sm:$0xff]  ;;  %v687_v15 = vld [vmem:[#allocation4 + $0x28] sm:$0xff]  ;;  %v709_v60 = vld [vmem:[#allocation4 + $0xd8] sm:$0xff] }
  0x5f   : > { %4083 = vmatpush3.bf16.msra.mxu0 %v4232_v19  ;;  %1115 = vmatpush1.bf16.msra.mxu1 %v3747_v38  ;;  %v686_v12 = vld [vmem:[#allocation4 + $0x20] sm:$0xff]  ;;  %v3717_v16 = vcombine.low %v683_v13, %v687_v15  ;;  %v3718_v17 = vcombine.high %v683_v13, %v687_v15  ;;  %v740_v19 = vld [vmem:[#allocation4 + $0x1d0] sm:$0xff]  ;;  %v713_v61 = vld [vmem:[#allocation4 + $0xf8] sm:$0xff] }
  0x60   : > { %4084 = vmatprep.subr.bf16.mxu0 %v4233_v23  ;;  %1116 = vmatprep.subr.bf16.mxu1 %v3740_v54  ;;  %v3716_v14 = vcombine.high %v682_v11, %v686_v12  ;;  %v3715_v18 = vcombine.low %v682_v11, %v686_v12  ;;  %v3776_v22 = vcombine.high %v740_v19, %v744_v20  ;;  %v745_v23 = vld [vmem:[#allocation4 + $0x1f8] sm:$0xff]  ;;  %v3696_v29 = vld [vmem:[%s476_s19] ss:$0 sm:$0xff]  ;;  %v704_v3 = vld [vmem:[#allocation4 + $0xb0] sm:$0xff] }
  0x61   : > { %v3777_v25 = vcombine.low %v741_v21, %v745_v23  ;;  %v3778_v26 = vcombine.high %v741_v21, %v745_v23  ;;  %v701_v4 = vld [vmem:[#allocation4 + $0x98] sm:$0xff]  ;;  %v3745_v7 = vcombine.low %v709_v60, %v713_v61  ;;  %v696_v11 = vld [vmem:[#allocation4 + $0x70] sm:$0xff] }
  0x62   : > { %v705_v5 = vld [vmem:[#allocation4 + $0xb8] sm:$0xff] }
  0x63   : > { %4085 = vmatpush3.bf16.msra.mxu0 %v4234_v24  ;;  %1117 = vmatpush1.bf16.msra.mxu1 %v3739_v58  ;;  %v3775_v24 = vcombine.low %v740_v19, %v744_v20  ;;  %v708_v58 = vld [vmem:[#allocation4 + $0xd0] sm:$0xff]  ;;  %v693_v12 = vld [vmem:[#allocation4 + $0x58] sm:$0xff]  ;;  %v3737_v15 = vcombine.low %v701_v4, %v705_v5 }
  0x64   : > { %4086 = vmatprep.subr.bf16.mxu0 %v4235_v28  ;;  %1118 = vmatprep.subr.bf16.mxu1 %v3732_v62  ;;  %v697_v13 = vld [vmem:[#allocation4 + $0x78] sm:$0xff]  ;;  %v688_v19 = vld [vmem:[#allocation4 + $0x30] sm:$0xff] }
  0x65   : > { %v685_v20 = vld [vmem:[#allocation4 + $0x18] sm:$0xff]  ;;  %v3729_v23 = vcombine.low %v693_v12, %v697_v13 }
  0x66   : > { %v689_v21 = vld [vmem:[#allocation4 + $0x38] sm:$0xff] }
  0x67   : > { %4087 = vmatpush3.bf16.msra.mxu0 %v4236_v32  ;;  %1119 = vmatpush1.bf16.msra.mxu1 %v3731_v2  ;;  %v732_v32 = vld [vmem:[#allocation4 + $0x190] sm:$0xff] }
  0x68   : > { %1149 = vmatprep.subr.bf16.mxu0 %v3774_v37  ;;  %1120 = vmatprep.subr.bf16.mxu1 %v3724_v6  ;;  %v3767_v46 = vcombine.low %v732_v32, %v736_v34  ;;  %v700_v2 = vld [vmem:[#allocation4 + $0x90] sm:$0xff]  ;;  %v3743_v6 = vcombine.low %v708_v58, %v712_v59 }
  0x6a   : > { %668 = vmatmul.mubr.bf16.vlgmr.msra.gmra.mxu0 %v3697_v39 }
  0x6b   : > { %1150 = vmatpush1.bf16.msra.mxu0 %v3773_v40  ;;  %1121 = vmatpush1.bf16.msra.mxu1 %v3723_v10  ;;  %v3768_v40 = vcombine.high %v732_v32, %v736_v34  ;;  %v692_v10 = vld [vmem:[#allocation4 + $0x50] sm:$0xff] }
  0x6c   : > { %1151 = vmatprep.subr.bf16.mxu0 %v3766_v43  ;;  %1122 = vmatprep.subr.bf16.mxu1 %v3716_v14  ;;  %v728_v43 = vld [vmem:[#allocation4 + $0x170] sm:$0xff]  ;;  %v3735_v14 = vcombine.low %v700_v2, %v704_v3 }
  0x6d   : > { %1181 = vmatprep.mubr.bf16.mxu0 %v4800_v27  ;;  %v3759_v54 = vcombine.low %v724_v42, %v728_v43  ;;  %v4247_v32 = vld [vmem:[#allocation6 + $0xc4] ss:$16 sps:$4 sm:$0xff]   ;;  %v4245_v34 = vld [vmem:[#allocation6 + $0xc0] ss:$16 sps:$4 sm:$0xff]  }
  0x6f   : > { %1152 = vmatpush1.bf16.msra.mxu0 %v3765_v44  ;;  %1123 = vmatpush1.bf16.msra.mxu1 %v3715_v18  ;;  %v725_v44 = vld [vmem:[#allocation4 + $0x158] sm:$0xff]  ;;  %v684_v18 = vld [vmem:[#allocation4 + $0x10] sm:$0xff] }
  0x70   : > { %1153 = vmatprep.subr.bf16.mxu0 %v3758_v47  ;;  %1190 = vmatprep.subr.bf16.mxu1 %v3776_v22  ;;  %v3769_v47 = vcombine.low %v733_v35, %v737_v36  ;;  %v3761_v55 = vcombine.low %v725_v44, %v729_v45  ;;  %v3727_v22 = vcombine.low %v692_v10, %v696_v11  ;;  %v4248_v35 = vld [vmem:[#allocation6 + $0x2c0] ss:$16 sps:$4 sm:$0xff]   ;;  %v4253_v36 = vld [vmem:[#allocation6 + $0xa4] ss:$16 sps:$4 sm:$0xff]  }
  0x73   : > { %1154 = vmatpush1.bf16.msra.mxu0 %v3757_v48  ;;  %v3760_v48 = vcombine.high %v724_v42, %v728_v43  ;;  %v4262_v42 = vld [vmem:[#allocation6 + $0x284] ss:$16 sps:$4 sm:$0xff]   ;;  %v4257_v43 = vld [vmem:[#allocation6 + $0x80] ss:$16 sps:$4 sm:$0xff]  }
  0x74   : > { %1155 = vmatprep.subr.bf16.mxu0 %v3750_v49  ;;  %v3762_v49 = vcombine.high %v725_v44, %v729_v45  ;;  %v4265_v44 = vld [vmem:[#allocation6 + $0x64] ss:$16 sps:$4 sm:$0xff]  }
  0x75   : > { %v4268_v45 = vld [vmem:[#allocation6 + $0x264] ss:$16 sps:$4 sm:$0xff]  }
  0x77   : > { %1156 = vmatpush1.bf16.msra.mxu0 %v3749_v50  ;;  %v716_v50 = vld [vmem:[#allocation4 + $0x110] sm:$0xff] }
  0x78   : > { %1157 = vmatprep.subr.bf16.mxu0 %v3742_v57  ;;  %v3754_v57 = vcombine.high %v717_v52, %v721_v53  ;;  %v3751_v62 = vcombine.low %v716_v50, %v720_v51  ;;  %v4277_v52 = vld [vmem:[#allocation6 + $0x24] ss:$16 sps:$4 sm:$0xff]  }
  0x79   : > { %v4280_v53 = vld [vmem:[#allocation6 + $0x224] ss:$16 sps:$4 sm:$0xff]  }
  0x7b   : > { %1158 = vmatpush1.bf16.msra.mxu0 %v3741_v56  ;;  %v3752_v56 = vcombine.high %v716_v50, %v720_v51  ;;  %v4269_v50 = vld [vmem:[#allocation6 + $0x40] ss:$16 sps:$4 sm:$0xff]  }
  0x7c   : > { %1159 = vmatprep.subr.bf16.mxu0 %v3734_v1  ;;  %v3746_v1 = vcombine.high %v709_v60, %v713_v61  ;;  %v4272_v51 = vld [vmem:[#allocation6 + $0x240] ss:$16 sps:$4 sm:$0xff]   ;;  %v4289_v60 = vld [vmem:[#allocation6 + $0x1e4] ss:$16 sps:$4 sm:$0xff]  }
  0x7d   : > { %v4292_v61 = vld [vmem:[#allocation6 + $0x3e4] ss:$16 sps:$4 sm:$0xff]  }
  0x7f   : > { %1160 = vmatpush1.bf16.msra.mxu0 %v3733_v0  ;;  %v3744_v0 = vcombine.high %v708_v58, %v712_v59  ;;  %v4281_v58 = vld [vmem:[#allocation6] ss:$16 sps:$4 sm:$0xff]  }
  0x80   : > { %1161 = vmatprep.subr.bf16.mxu0 %v3726_v9  ;;  %v3738_v9 = vcombine.high %v701_v4, %v705_v5  ;;  %v4284_v59 = vld [vmem:[#allocation6 + $0x200] ss:$16 sps:$4 sm:$0xff]   ;;  %v4301_v4 = vld [vmem:[#allocation6 + $0x1a4] ss:$16 sps:$4 sm:$0xff]  }
  0x81   : > { %v4304_v5 = vld [vmem:[#allocation6 + $0x3a4] ss:$16 sps:$4 sm:$0xff]  }
  0x83   : > { %1162 = vmatpush1.bf16.msra.mxu0 %v3725_v8  ;;  %v3736_v8 = vcombine.high %v700_v2, %v704_v3  ;;  %v4293_v2 = vld [vmem:[#allocation6 + $0x1c0] ss:$16 sps:$4 sm:$0xff]  }
  0x84   : > { %1163 = vmatprep.subr.bf16.mxu0 %v3718_v17  ;;  %v3730_v17 = vcombine.high %v693_v12, %v697_v13  ;;  %v4296_v3 = vld [vmem:[#allocation6 + $0x3c0] ss:$16 sps:$4 sm:$0xff]   ;;  %v4313_v12 = vld [vmem:[#allocation6 + $0x164] ss:$16 sps:$4 sm:$0xff]  }
  0x85   : > { %v4316_v13 = vld [vmem:[#allocation6 + $0x364] ss:$16 sps:$4 sm:$0xff]  }
  0x87   : > { %1164 = vmatpush1.bf16.msra.mxu0 %v3717_v16  ;;  %v3728_v16 = vcombine.high %v692_v10, %v696_v11  ;;  %v4305_v10 = vld [vmem:[#allocation6 + $0x180] ss:$16 sps:$4 sm:$0xff]  }
  0x88   : > { %1231 = vmatprep.subr.bf16.mxu0 %v3778_v26  ;;  %v3719_v26 = vcombine.low %v684_v18, %v688_v19  ;;  %v4308_v11 = vld [vmem:[#allocation6 + $0x380] ss:$16 sps:$4 sm:$0xff]  }
 0x12a   : > { %v4088_v28 = vpop.f32.mrf.mxu0 }
 0x12c   : > { %v4089_v30 = vpop.f32.mrf.mxu0 }
 0x12d   : > { %v4090_v31 = vadd.f32 %v4089_v30, %v4088_v28  ;;  %v4241_v28 = vld [vmem:[#allocation6 + $0xe4] ss:$16 sps:$4 sm:$0xff]   ;;  %v4239_v30 = vld [vmem:[#allocation6 + $0xe0] ss:$16 sps:$4 sm:$0xff]  }
 0x12e   : > { %v4091_v33 = vpop.f32.mrf.mxu0 }
 0x12f   : > { %v675_v37 = vadd.f32 %v4090_v31, %v3696_v29  ;;  %v4244_v29 = vld [vmem:[#allocation6 + $0x2e4] ss:$16 sps:$4 sm:$0xff]   ;;  %v4242_v31 = vld [vmem:[#allocation6 + $0x2e0] ss:$16 sps:$4 sm:$0xff]  }
 0x130   : > { %v4092_v38 = vpop.f32.mrf.mxu0  ;;  %v4250_v33 = vld [vmem:[#allocation6 + $0x2c4] ss:$16 sps:$4 sm:$0xff]  }
 0x131   : > { %676 = vst [vmem:[%s480_s25] sm:$0xff] %v675_v37  ;;  %v5004_v39 = vpack.c.bf16 %v675_v37, %v675_v37  ;;  %v4256_v37 = vld [vmem:[#allocation6 + $0x2a4] ss:$16 sps:$4 sm:$0xff]   ;;  %v4251_v38 = vld [vmem:[#allocation6 + $0xa0] ss:$16 sps:$4 sm:$0xff]  }
 0x133   : > { %1141 = vmatmul.mubr.bf16.vlgmr.msra.gmra.mxu1 %v5004_v39  ;;  %1182 = vmatmul.mubr.bf16.vlgmr.msra.gmra.mxu0 %v5004_v39 }
 0x134   : > { %1191 = vmatpush1.bf16.msra.mxu1 %v3775_v24  ;;  %1232 = vmatpush1.bf16.msra.mxu0 %v3777_v25  ;;  %v3720_v24 = vcombine.high %v684_v18, %v688_v19  ;;  %v3722_v25 = vcombine.high %v685_v20, %v689_v21  ;;  %v4317_v18 = vld [vmem:[#allocation6 + $0x140] ss:$16 sps:$4 sm:$0xff]  }
 0x135   : > { %1192 = vmatprep.subr.bf16.mxu1 %v3768_v40  ;;  %1233 = vmatprep.subr.bf16.mxu0 %v3770_v41  ;;  %v4254_v40 = vld [vmem:[#allocation6 + $0x2a0] ss:$16 sps:$4 sm:$0xff]   ;;  %v4259_v41 = vld [vmem:[#allocation6 + $0x84] ss:$16 sps:$4 sm:$0xff]  }
 0x136   : > { %1222 = vmatprep.mubr.bf16.mxu1 %v4800_v27  ;;  %1263 = vmatprep.mubr.bf16.mxu0 %v4800_v27  ;;  %v3721_v27 = vcombine.low %v685_v20, %v689_v21  ;;  %v4320_v19 = vld [vmem:[#allocation6 + $0x340] ss:$16 sps:$4 sm:$0xff]   ;;  %v4325_v20 = vld [vmem:[#allocation6 + $0x124] ss:$16 sps:$4 sm:$0xff]  }
 0x137   : > { %v4328_v21 = vld [vmem:[#allocation6 + $0x324] ss:$16 sps:$4 sm:$0xff]  }
 0x138   : > { %1193 = vmatpush1.bf16.msra.mxu1 %v3767_v46  ;;  %1234 = vmatpush1.bf16.msra.mxu0 %v3769_v47  ;;  %v4263_v46 = vld [vmem:[#allocation6 + $0x60] ss:$16 sps:$4 sm:$0xff]  }
 0x139   : > { %1194 = vmatprep.subr.bf16.mxu1 %v3760_v48  ;;  %1235 = vmatprep.subr.bf16.mxu0 %v3762_v49  ;;  %v4266_v47 = vld [vmem:[#allocation6 + $0x260] ss:$16 sps:$4 sm:$0xff]   ;;  %v4271_v48 = vld [vmem:[#allocation6 + $0x44] ss:$16 sps:$4 sm:$0xff]  }
 0x13a   : > { %v4274_v49 = vld [vmem:[#allocation6 + $0x244] ss:$16 sps:$4 sm:$0xff]  }
 0x13c   : > { %1195 = vmatpush1.bf16.msra.mxu1 %v3759_v54  ;;  %1236 = vmatpush1.bf16.msra.mxu0 %v3761_v55  ;;  %v4275_v54 = vld [vmem:[#allocation6 + $0x20] ss:$16 sps:$4 sm:$0xff]  }
 0x13d   : > { %1196 = vmatprep.subr.bf16.mxu1 %v3752_v56  ;;  %1237 = vmatprep.subr.bf16.mxu0 %v3754_v57  ;;  %v4278_v55 = vld [vmem:[#allocation6 + $0x220] ss:$16 sps:$4 sm:$0xff]   ;;  %v4283_v56 = vld [vmem:[#allocation6 + $0x4] ss:$16 sps:$4 sm:$0xff]  }
 0x13e   : > { %v4286_v57 = vld [vmem:[#allocation6 + $0x204] ss:$16 sps:$4 sm:$0xff]  }
 0x140   : > { %1197 = vmatpush1.bf16.msra.mxu1 %v3751_v62  ;;  %1238 = vmatpush1.bf16.msra.mxu0 %v3753_v63  ;;  %v4287_v62 = vld [vmem:[#allocation6 + $0x1e0] ss:$16 sps:$4 sm:$0xff]  }
 0x141   : > { %1198 = vmatprep.subr.bf16.mxu1 %v3744_v0  ;;  %1239 = vmatprep.subr.bf16.mxu0 %v3746_v1  ;;  %v4290_v63 = vld [vmem:[#allocation6 + $0x3e0] ss:$16 sps:$4 sm:$0xff]   ;;  %v4295_v0 = vld [vmem:[#allocation6 + $0x1c4] ss:$16 sps:$4 sm:$0xff]  }
 0x142   : > { %v4298_v1 = vld [vmem:[#allocation6 + $0x3c4] ss:$16 sps:$4 sm:$0xff]  }
 0x144   : > { %1199 = vmatpush1.bf16.msra.mxu1 %v3743_v6  ;;  %1240 = vmatpush1.bf16.msra.mxu0 %v3745_v7  ;;  %v4299_v6 = vld [vmem:[#allocation6 + $0x1a0] ss:$16 sps:$4 sm:$0xff]  }
 0x145   : > { %1200 = vmatprep.subr.bf16.mxu1 %v3736_v8  ;;  %1241 = vmatprep.subr.bf16.mxu0 %v3738_v9  ;;  %v4302_v7 = vld [vmem:[#allocation6 + $0x3a0] ss:$16 sps:$4 sm:$0xff]   ;;  %v4307_v8 = vld [vmem:[#allocation6 + $0x184] ss:$16 sps:$4 sm:$0xff]  }
 0x146   : > { %v4310_v9 = vld [vmem:[#allocation6 + $0x384] ss:$16 sps:$4 sm:$0xff]  }
 0x148   : > { %1201 = vmatpush1.bf16.msra.mxu1 %v3735_v14  ;;  %1242 = vmatpush1.bf16.msra.mxu0 %v3737_v15  ;;  %v4311_v14 = vld [vmem:[#allocation6 + $0x160] ss:$16 sps:$4 sm:$0xff]  }
 0x149   : > { %1202 = vmatprep.subr.bf16.mxu1 %v3728_v16  ;;  %1243 = vmatprep.subr.bf16.mxu0 %v3730_v17  ;;  %v4314_v15 = vld [vmem:[#allocation6 + $0x360] ss:$16 sps:$4 sm:$0xff]   ;;  %v4319_v16 = vld [vmem:[#allocation6 + $0x144] ss:$16 sps:$4 sm:$0xff]  }
 0x14a   : > { %v4322_v17 = vld [vmem:[#allocation6 + $0x344] ss:$16 sps:$4 sm:$0xff]  }
 0x14c   : > { %1203 = vmatpush1.bf16.msra.mxu1 %v3727_v22  ;;  %1244 = vmatpush1.bf16.msra.mxu0 %v3729_v23  ;;  %v4323_v22 = vld [vmem:[#allocation6 + $0x120] ss:$16 sps:$4 sm:$0xff]  }
 0x14d   : > { %1204 = vmatprep.subr.bf16.mxu1 %v3720_v24  ;;  %1245 = vmatprep.subr.bf16.mxu0 %v3722_v25  ;;  %v4326_v23 = vld [vmem:[#allocation6 + $0x320] ss:$16 sps:$4 sm:$0xff]   ;;  %v4331_v24 = vld [vmem:[#allocation6 + $0x104] ss:$16 sps:$4 sm:$0xff]  }
 0x14e   : > { %v4334_v25 = vld [vmem:[#allocation6 + $0x304] ss:$16 sps:$4 sm:$0xff]  }
 0x150   : > { %1205 = vmatpush1.bf16.msra.mxu1 %v3719_v26  ;;  %1246 = vmatpush1.bf16.msra.mxu0 %v3721_v27  ;;  %v4329_v26 = vld [vmem:[#allocation6 + $0x100] ss:$16 sps:$4 sm:$0xff]  }
 0x151   : > { %2846 = vmatprep.subr.bf16.mxu1 %v4241_v28  ;;  %2887 = vmatprep.subr.bf16.mxu0 %v4244_v29  ;;  %v4332_v27 = vld [vmem:[#allocation6 + $0x300] ss:$16 sps:$4 sm:$0xff]   ;;  %v4337_v28 = vld [vmem:[#allocation6 + $0x4e4] ss:$16 sps:$4 sm:$0xff]  }
 0x152   : > { %v4340_v29 = vld [vmem:[#allocation6 + $0x6e4] ss:$16 sps:$4 sm:$0xff]  }
 0x153   : > { %1223 = vmatmul.mubr.bf16.vlgmr.msra.gmra.mxu1 %v5004_v39  ;;  %1264 = vmatmul.mubr.bf16.vlgmr.msra.gmra.mxu0 %v5004_v39  ;;  %v4260_v39 = vld [vmem:[#allocation6 + $0x280] ss:$16 sps:$4 sm:$0xff]  }
 0x154   : > { %2847 = vmatpush1.bf16.msra.mxu1 %v4239_v30  ;;  %2888 = vmatpush1.bf16.msra.mxu0 %v4242_v31  ;;  %v748_v30 = vlaneseq }
 0x155   : > { %2848 = vmatprep.subr.bf16.mxu1 %v4247_v32  ;;  %2889 = vmatprep.subr.bf16.mxu0 %v4250_v33 }
 0x156   : > { %v5010_v31 = vshrl.u32 %v748_v30, 7  ;;  %v4382_v30 = vld [vmem:[#allocation6 + $0x604] ss:$16 sps:$4 sm:$0xff]  }
 0x158   : > { %2849 = vmatpush1.bf16.msra.mxu1 %v4245_v34  ;;  %2890 = vmatpush1.bf16.msra.mxu0 %v4248_v35  ;;  %v750_v32 = vsub.s32 0, %v5010_v31  ;;  %v758_v33 = vsub.s32 2, %v5010_v31  ;;  %v5017_v34 = vld [vmem:[%s5215_s4] sm:$0xff]  ;;  %v754_v35 = vsub.s32 1, %v5010_v31 }
 0x159   : > { %2850 = vmatprep.subr.bf16.mxu1 %v4253_v36  ;;  %2891 = vmatprep.subr.bf16.mxu0 %v4256_v37  ;;  %v762_v36 = vsub.s32 3, %v5010_v31 }
 0x15a   : > { %v751_v37 = vrot.slane %v5017_v34, %v750_v32 }
 0x15c   : > { %2851 = vmatpush1.bf16.msra.mxu1 %v4251_v38  ;;  %2892 = vmatpush1.bf16.msra.mxu0 %v4254_v40  ;;  %v759_v38 = vrot.slane %v5017_v34, %v758_v33  ;;  %v755_v40 = vrot.slane %v5017_v34, %v754_v35 }
 0x15d   : > { %2852 = vmatprep.subr.bf16.mxu1 %v4259_v41  ;;  %2893 = vmatprep.subr.bf16.mxu0 %v4262_v42  ;;  %v763_v41 = vrot.slane %v5017_v34, %v762_v36 }
 0x160   : > { %2853 = vmatpush1.bf16.msra.mxu1 %v4257_v43  ;;  %2894 = vmatpush1.bf16.msra.mxu0 %v4260_v39 }
 0x161   : > { %2854 = vmatprep.subr.bf16.mxu1 %v4265_v44  ;;  %2895 = vmatprep.subr.bf16.mxu0 %v4268_v45 }
 0x164   : > { %2855 = vmatpush1.bf16.msra.mxu1 %v4263_v46  ;;  %2896 = vmatpush1.bf16.msra.mxu0 %v4266_v47 }
 0x165   : > { %2856 = vmatprep.subr.bf16.mxu1 %v4271_v48  ;;  %2897 = vmatprep.subr.bf16.mxu0 %v4274_v49 }
 0x168   : > { %2857 = vmatpush1.bf16.msra.mxu1 %v4269_v50  ;;  %2898 = vmatpush1.bf16.msra.mxu0 %v4272_v51 }
 0x169   : > { %2858 = vmatprep.subr.bf16.mxu1 %v4277_v52  ;;  %2899 = vmatprep.subr.bf16.mxu0 %v4280_v53 }
 0x16c   : > { %2859 = vmatpush1.bf16.msra.mxu1 %v4275_v54  ;;  %2900 = vmatpush1.bf16.msra.mxu0 %v4278_v55 }
 0x16d   : > { %2860 = vmatprep.subr.bf16.mxu1 %v4283_v56  ;;  %2901 = vmatprep.subr.bf16.mxu0 %v4286_v57 }
 0x170   : > { %2861 = vmatpush1.bf16.msra.mxu1 %v4281_v58  ;;  %2902 = vmatpush1.bf16.msra.mxu0 %v4284_v59  ;;  %v4335_v59 = vld [vmem:[#allocation6 + $0x4e0] ss:$16 sps:$4 sm:$0xff]  }
 0x171   : > { %2862 = vmatprep.subr.bf16.mxu1 %v4289_v60  ;;  %2903 = vmatprep.subr.bf16.mxu0 %v4292_v61  ;;  %v4338_v60 = vld [vmem:[#allocation6 + $0x6e0] ss:$16 sps:$4 sm:$0xff]  }
 0x174   : > { %2863 = vmatpush2.bf16.msra.mxu1 %v4287_v62  ;;  %2904 = vmatpush2.bf16.msra.mxu0 %v4290_v63  ;;  %v4343_v63 = vld [vmem:[#allocation6 + $0x4c4] ss:$16 sps:$4 sm:$0xff]  }
 0x175   : > { %2864 = vmatprep.subr.bf16.mxu1 %v4295_v0  ;;  %2905 = vmatprep.subr.bf16.mxu0 %v4298_v1  ;;  %v4346_v0 = vld [vmem:[#allocation6 + $0x6c4] ss:$16 sps:$4 sm:$0xff]   ;;  %v4341_v1 = vld [vmem:[#allocation6 + $0x4c0] ss:$16 sps:$4 sm:$0xff]  }
 0x178   : > { %2865 = vmatpush2.bf16.msra.mxu1 %v4293_v2  ;;  %2906 = vmatpush2.bf16.msra.mxu0 %v4296_v3  ;;  %v4344_v2 = vld [vmem:[#allocation6 + $0x6c0] ss:$16 sps:$4 sm:$0xff]   ;;  %v4349_v3 = vld [vmem:[#allocation6 + $0x4a4] ss:$16 sps:$4 sm:$0xff]  }
 0x179   : > { %2866 = vmatprep.subr.bf16.mxu1 %v4301_v4  ;;  %2907 = vmatprep.subr.bf16.mxu0 %v4304_v5  ;;  %v4352_v4 = vld [vmem:[#allocation6 + $0x6a4] ss:$16 sps:$4 sm:$0xff]   ;;  %v4347_v5 = vld [vmem:[#allocation6 + $0x4a0] ss:$16 sps:$4 sm:$0xff]  }
 0x17c   : > { %2867 = vmatpush2.bf16.msra.mxu1 %v4299_v6  ;;  %2908 = vmatpush2.bf16.msra.mxu0 %v4302_v7  ;;  %v4350_v6 = vld [vmem:[#allocation6 + $0x6a0] ss:$16 sps:$4 sm:$0xff]   ;;  %v4355_v7 = vld [vmem:[#allocation6 + $0x484] ss:$16 sps:$4 sm:$0xff]  }
 0x17d   : > { %2868 = vmatprep.subr.bf16.mxu1 %v4307_v8  ;;  %2909 = vmatprep.subr.bf16.mxu0 %v4310_v9  ;;  %v4358_v8 = vld [vmem:[#allocation6 + $0x684] ss:$16 sps:$4 sm:$0xff]   ;;  %v4353_v9 = vld [vmem:[#allocation6 + $0x480] ss:$16 sps:$4 sm:$0xff]  }
 0x180   : > { %2869 = vmatpush2.bf16.msra.mxu1 %v4305_v10  ;;  %2910 = vmatpush2.bf16.msra.mxu0 %v4308_v11  ;;  %v4356_v10 = vld [vmem:[#allocation6 + $0x680] ss:$16 sps:$4 sm:$0xff]   ;;  %v4361_v11 = vld [vmem:[#allocation6 + $0x464] ss:$16 sps:$4 sm:$0xff]  }
 0x181   : > { %2870 = vmatprep.subr.bf16.mxu1 %v4313_v12  ;;  %2911 = vmatprep.subr.bf16.mxu0 %v4316_v13  ;;  %v4364_v12 = vld [vmem:[#allocation6 + $0x664] ss:$16 sps:$4 sm:$0xff]   ;;  %v4359_v13 = vld [vmem:[#allocation6 + $0x460] ss:$16 sps:$4 sm:$0xff]  }
 0x184   : > { %2871 = vmatpush2.bf16.msra.mxu1 %v4311_v14  ;;  %2912 = vmatpush2.bf16.msra.mxu0 %v4314_v15  ;;  %v4362_v14 = vld [vmem:[#allocation6 + $0x660] ss:$16 sps:$4 sm:$0xff]   ;;  %v4367_v15 = vld [vmem:[#allocation6 + $0x444] ss:$16 sps:$4 sm:$0xff]  }
 0x185   : > { %2872 = vmatprep.subr.bf16.mxu1 %v4319_v16  ;;  %2913 = vmatprep.subr.bf16.mxu0 %v4322_v17  ;;  %v4370_v16 = vld [vmem:[#allocation6 + $0x644] ss:$16 sps:$4 sm:$0xff]   ;;  %v4365_v17 = vld [vmem:[#allocation6 + $0x440] ss:$16 sps:$4 sm:$0xff]  }
 0x188   : > { %2873 = vmatpush2.bf16.msra.mxu1 %v4317_v18  ;;  %2914 = vmatpush2.bf16.msra.mxu0 %v4320_v19  ;;  %v4368_v18 = vld [vmem:[#allocation6 + $0x640] ss:$16 sps:$4 sm:$0xff]   ;;  %v770_v19 = vsub.s32 5, %v5010_v31 }
 0x189   : > { %2874 = vmatprep.subr.bf16.mxu1 %v4325_v20  ;;  %2915 = vmatprep.subr.bf16.mxu0 %v4328_v21  ;;  %v778_v20 = vsub.s32 7, %v5010_v31  ;;  %v4373_v21 = vld [vmem:[#allocation6 + $0x424] ss:$16 sps:$4 sm:$0xff]  }
 0x18c   : > { %2875 = vmatpush2.bf16.msra.mxu1 %v4323_v22  ;;  %2916 = vmatpush2.bf16.msra.mxu0 %v4326_v23  ;;  %v4376_v22 = vld [vmem:[#allocation6 + $0x624] ss:$16 sps:$4 sm:$0xff]   ;;  %v771_v23 = vrot.slane %v5017_v34, %v770_v19 }
 0x18d   : > { %2876 = vmatprep.subr.bf16.mxu1 %v4331_v24  ;;  %2917 = vmatprep.subr.bf16.mxu0 %v4334_v25  ;;  %v779_v24 = vrot.slane %v5017_v34, %v778_v20  ;;  %v4371_v25 = vld [vmem:[#allocation6 + $0x420] ss:$16 sps:$4 sm:$0xff]   ;;  %v4421_v19 = vld [vmem:[#allocation6 + $0x524] ss:$16 sps:$4 sm:$0xff]  }
 0x18e   : > { %v4424_v20 = vld [vmem:[#allocation6 + $0x724] ss:$16 sps:$4 sm:$0xff]  }
 0x190   : > { %2877 = vmatpush2.bf16.msra.mxu1 %v4329_v26  ;;  %2918 = vmatpush2.bf16.msra.mxu0 %v4332_v27  ;;  %v4374_v26 = vld [vmem:[#allocation6 + $0x620] ss:$16 sps:$4 sm:$0xff]  }
 0x191   : > { %2928 = vmatprep.subr.bf16.mxu1 %v4337_v28  ;;  %2969 = vmatprep.subr.bf16.mxu0 %v4340_v29  ;;  %v4379_v29 = vld [vmem:[#allocation6 + $0x404] ss:$16 sps:$4 sm:$0xff]  }
 0x1f3   : > { %v1142_v42 = vpop.f32.mrf.mxu1  ;;  %v1183_v43 = vpop.f32.mrf.mxu0 }
 0x1f4   : > { %v1143_v39 = vadd.f32 %v1142_v42, %v751_v37  ;;  %v1184_v44 = vadd.f32 %v1183_v43, %v759_v38  ;;  %v4377_v42 = vld [vmem:[#allocation6 + $0x400] ss:$16 sps:$4 sm:$0xff]  }
 0x1f5   : > { %v1144_v45 = vpop.f32.mrf.mxu1  ;;  %v1185_v46 = vpop.f32.mrf.mxu0  ;;  %v4380_v43 = vld [vmem:[#allocation6 + $0x600] ss:$16 sps:$4 sm:$0xff]  }
 0x1f6   : > { %v1145_v47 = vadd.f32 %v1144_v45, %v755_v40  ;;  %v1186_v48 = vadd.f32 %v1185_v46, %v763_v41  ;;  %v1272_v49 = vmax.f32 %v1143_v39, 0.0  ;;  %v1274_v50 = vmax.f32 %v1184_v44, 0.0  ;;  %v4385_v45 = vld [vmem:[#allocation6 + $0x5e4] ss:$16 sps:$4 sm:$0xff]  }
 0x1f7   : > { %v1146_v51 = vpop.f32.mrf.mxu1  ;;  %v1187_v52 = vpop.f32.mrf.mxu0  ;;  %v4388_v46 = vld [vmem:[#allocation6 + $0x7e4] ss:$16 sps:$4 sm:$0xff]  }
 0x1f8   : > { %v1273_v53 = vmax.f32 %v1145_v47, 0.0  ;;  %v1275_v54 = vmax.f32 %v1186_v48, 0.0  ;;  %v5037_v61 = vpack.c.bf16 %v1272_v49, %v1272_v49  ;;  %v5039_v62 = vpack.c.bf16 %v1274_v50, %v1274_v50 }
 0x1f9   : > { %v1147_v55 = vpop.f32.mrf.mxu1  ;;  %v1188_v56 = vpop.f32.mrf.mxu0 }
 0x1fa   : > { %v5033_v57 = vpack.c.bf16 %v1273_v53, %v1273_v53  ;;  %v5035_v58 = vpack.c.bf16 %v1275_v54, %v1275_v54  ;;  %v4383_v53 = vld [vmem:[#allocation6 + $0x5e0] ss:$16 sps:$4 sm:$0xff]   ;;  %v4391_v55 = vld [vmem:[#allocation6 + $0x5c4] ss:$16 sps:$4 sm:$0xff]  }
 0x1fb   : > { %v4386_v54 = vld [vmem:[#allocation6 + $0x7e0] ss:$16 sps:$4 sm:$0xff]   ;;  %v4394_v56 = vld [vmem:[#allocation6 + $0x7c4] ss:$16 sps:$4 sm:$0xff]  }
 0x1fc   : > { %2878 = vmatprep.mubr.bf16.mxu1 %v5033_v57  ;;  %2919 = vmatprep.mubr.bf16.mxu0 %v5035_v58 }
 0x1fd   : > { %2879 = vmatmul.mubr.bf16.vlgmr.msra.gmra.mxu1 %v5037_v61  ;;  %2920 = vmatmul.mubr.bf16.vlgmr.msra.gmra.mxu0 %v5039_v62 }
 0x1fe   : > { %2929 = vmatpush1.bf16.msra.mxu1 %v4335_v59  ;;  %2970 = vmatpush1.bf16.msra.mxu0 %v4338_v60  ;;  %v4389_v59 = vld [vmem:[#allocation6 + $0x5c0] ss:$16 sps:$4 sm:$0xff]  }
 0x1ff   : > { %2930 = vmatprep.subr.bf16.mxu1 %v4343_v63  ;;  %2971 = vmatprep.subr.bf16.mxu0 %v4346_v0  ;;  %v4392_v60 = vld [vmem:[#allocation6 + $0x7c0] ss:$16 sps:$4 sm:$0xff]   ;;  %v4397_v63 = vld [vmem:[#allocation6 + $0x5a4] ss:$16 sps:$4 sm:$0xff]  }
 0x200   : > { %v4400_v0 = vld [vmem:[#allocation6 + $0x7a4] ss:$16 sps:$4 sm:$0xff]  }
 0x202   : > { %2931 = vmatpush1.bf16.msra.mxu1 %v4341_v1  ;;  %2972 = vmatpush1.bf16.msra.mxu0 %v4344_v2  ;;  %v4395_v1 = vld [vmem:[#allocation6 + $0x5a0] ss:$16 sps:$4 sm:$0xff]  }
 0x203   : > { %2932 = vmatprep.subr.bf16.mxu1 %v4349_v3  ;;  %2973 = vmatprep.subr.bf16.mxu0 %v4352_v4  ;;  %v4398_v2 = vld [vmem:[#allocation6 + $0x7a0] ss:$16 sps:$4 sm:$0xff]   ;;  %v4403_v3 = vld [vmem:[#allocation6 + $0x584] ss:$16 sps:$4 sm:$0xff]  }
 0x204   : > { %v4406_v4 = vld [vmem:[#allocation6 + $0x784] ss:$16 sps:$4 sm:$0xff]  }
 0x206   : > { %2933 = vmatpush1.bf16.msra.mxu1 %v4347_v5  ;;  %2974 = vmatpush1.bf16.msra.mxu0 %v4350_v6  ;;  %v4401_v5 = vld [vmem:[#allocation6 + $0x580] ss:$16 sps:$4 sm:$0xff]  }
 0x207   : > { %2934 = vmatprep.subr.bf16.mxu1 %v4355_v7  ;;  %2975 = vmatprep.subr.bf16.mxu0 %v4358_v8  ;;  %v4404_v6 = vld [vmem:[#allocation6 + $0x780] ss:$16 sps:$4 sm:$0xff]   ;;  %v4409_v7 = vld [vmem:[#allocation6 + $0x564] ss:$16 sps:$4 sm:$0xff]  }
 0x208   : > { %v4412_v8 = vld [vmem:[#allocation6 + $0x764] ss:$16 sps:$4 sm:$0xff]  }
 0x20a   : > { %2935 = vmatpush1.bf16.msra.mxu1 %v4353_v9  ;;  %2976 = vmatpush1.bf16.msra.mxu0 %v4356_v10  ;;  %v4407_v9 = vld [vmem:[#allocation6 + $0x560] ss:$16 sps:$4 sm:$0xff]  }
 0x20b   : > { %2936 = vmatprep.subr.bf16.mxu1 %v4361_v11  ;;  %2977 = vmatprep.subr.bf16.mxu0 %v4364_v12  ;;  %v4410_v10 = vld [vmem:[#allocation6 + $0x760] ss:$16 sps:$4 sm:$0xff]   ;;  %v766_v11 = vsub.s32 4, %v5010_v31  ;;  %v774_v12 = vsub.s32 6, %v5010_v31 }
 0x20e   : > { %2937 = vmatpush1.bf16.msra.mxu1 %v4359_v13  ;;  %2978 = vmatpush1.bf16.msra.mxu0 %v4362_v14  ;;  %v4415_v13 = vld [vmem:[#allocation6 + $0x544] ss:$16 sps:$4 sm:$0xff]  }
 0x20f   : > { %2938 = vmatprep.subr.bf16.mxu1 %v4367_v15  ;;  %2979 = vmatprep.subr.bf16.mxu0 %v4370_v16  ;;  %v4418_v14 = vld [vmem:[#allocation6 + $0x744] ss:$16 sps:$4 sm:$0xff]   ;;  %v4413_v15 = vld [vmem:[#allocation6 + $0x540] ss:$16 sps:$4 sm:$0xff]  }
 0x210   : > { %v4416_v16 = vld [vmem:[#allocation6 + $0x740] ss:$16 sps:$4 sm:$0xff]  }
 0x212   : > { %2939 = vmatpush1.bf16.msra.mxu1 %v4365_v17  ;;  %2980 = vmatpush1.bf16.msra.mxu0 %v4368_v18  ;;  %v767_v17 = vrot.slane %v5017_v34, %v766_v11  ;;  %v775_v18 = vrot.slane %v5017_v34, %v774_v12  ;;  %v4428_v34 = vld [vmem:[#allocation6 + $0x700] ss:$16 sps:$4 sm:$0xff]   ;;  %v4484_v11 = vld [vmem:[#allocation6 + $0x3ec] ss:$16 sps:$4 sm:$0xff]   ;;  %v4479_v12 = vld [vmem:[#allocation6 + $0x1e8] ss:$16 sps:$4 sm:$0xff]  }
 0x213   : > { %v5049_v27 = vpop.f32.mrf.mxu1  ;;  %v5051_v28 = vpop.f32.mrf.mxu0  ;;  %2940 = vmatprep.subr.bf16.mxu1 %v4373_v21  ;;  %2981 = vmatprep.subr.bf16.mxu0 %v4376_v22  ;;  %v4419_v21 = vld [vmem:[#allocation6 + $0x520] ss:$16 sps:$4 sm:$0xff]  }
 0x214   : > { %v4422_v22 = vld [vmem:[#allocation6 + $0x720] ss:$16 sps:$4 sm:$0xff]  }
 0x215   : > { %v1226_v37 = vpop.f32.mrf.mxu1  ;;  %v1267_v38 = vpop.f32.mrf.mxu0 }
 0x216   : > { %v1227_v40 = vadd.f32 %v1226_v37, %v771_v23  ;;  %v1268_v41 = vadd.f32 %v1267_v38, %v779_v24  ;;  %2941 = vmatpush1.bf16.msra.mxu1 %v4371_v25  ;;  %2982 = vmatpush1.bf16.msra.mxu0 %v4374_v26  ;;  %v1225_v23 = vadd.f32 %v5049_v27, %v767_v17  ;;  %v4427_v25 = vld [vmem:[#allocation6 + $0x504] ss:$16 sps:$4 sm:$0xff]   ;;  %v4433_v38 = vld [vmem:[#allocation6 + $0xec] ss:$16 sps:$4 sm:$0xff]   ;;  %v4488_v17 = vld [vmem:[#allocation6 + $0x3c8] ss:$16 sps:$4 sm:$0xff]  }
 0x217   : > { %v1228_v39 = vpop.f32.mrf.mxu1  ;;  %v1269_v44 = vpop.f32.mrf.mxu0  ;;  %2942 = vmatprep.subr.bf16.mxu1 %v4379_v29  ;;  %2983 = vmatprep.subr.bf16.mxu0 %v4382_v30  ;;  %v1266_v24 = vadd.f32 %v5051_v28, %v775_v18  ;;  %v4430_v26 = vld [vmem:[#allocation6 + $0x704] ss:$16 sps:$4 sm:$0xff]   ;;  %v4425_v29 = vld [vmem:[#allocation6 + $0x500] ss:$16 sps:$4 sm:$0xff]   ;;  %v4493_v18 = vld [vmem:[#allocation6 + $0x1ac] ss:$16 sps:$4 sm:$0xff]  }
 0x218   : > { %v1277_v47 = vmax.f32 %v1227_v40, 0.0  ;;  %v1279_v48 = vmax.f32 %v1268_v41, 0.0  ;;  %v1276_v30 = vmax.f32 %v1225_v23, 0.0  ;;  %v4436_v40 = vld [vmem:[#allocation6 + $0x2ec] ss:$16 sps:$4 sm:$0xff]  }
 0x219   : > { %v1229_v49 = vpop.f32.mrf.mxu1  ;;  %v1270_v50 = vpop.f32.mrf.mxu0  ;;  %v1278_v37 = vmax.f32 %v1266_v24, 0.0  ;;  %v4431_v41 = vld [vmem:[#allocation6 + $0xe8] ss:$16 sps:$4 sm:$0xff]   ;;  %v4442_v39 = vld [vmem:[#allocation6 + $0x2cc] ss:$16 sps:$4 sm:$0xff]  }
 0x21a   : > { %v5053_v51 = vpack.c.bf16 %v1277_v47, %v1277_v47  ;;  %v5055_v52 = vpack.c.bf16 %v1279_v48, %v1279_v48  ;;  %2943 = vmatpush1.bf16.msra.mxu1 %v4377_v42  ;;  %2984 = vmatpush1.bf16.msra.mxu0 %v4380_v43  ;;  %v5065_v27 = vpack.c.bf16 %v1276_v30, %v1276_v30  ;;  %v4434_v42 = vld [vmem:[#allocation6 + $0x2e8] ss:$16 sps:$4 sm:$0xff]   ;;  %v4439_v43 = vld [vmem:[#allocation6 + $0xcc] ss:$16 sps:$4 sm:$0xff]  }
 0x21b   : > { %2944 = vmatprep.subr.bf16.mxu1 %v4385_v45  ;;  %2985 = vmatprep.subr.bf16.mxu0 %v4388_v46  ;;  %v5067_v28 = vpack.c.bf16 %v1278_v37, %v1278_v37  ;;  %v4437_v44 = vld [vmem:[#allocation6 + $0xc8] ss:$16 sps:$4 sm:$0xff]   ;;  %v4445_v46 = vld [vmem:[#allocation6 + $0xac] ss:$16 sps:$4 sm:$0xff]  }
 0x21c   : > { %2960 = vmatprep.mubr.bf16.mxu1 %v5053_v51  ;;  %3001 = vmatprep.mubr.bf16.mxu0 %v5055_v52  ;;  %v4440_v45 = vld [vmem:[#allocation6 + $0x2c8] ss:$16 sps:$4 sm:$0xff]   ;;  %v4448_v47 = vld [vmem:[#allocation6 + $0x2ac] ss:$16 sps:$4 sm:$0xff]  }
 0x21d   : > { %v4443_v48 = vld [vmem:[#allocation6 + $0xa8] ss:$16 sps:$4 sm:$0xff]   ;;  %v4451_v50 = vld [vmem:[#allocation6 + $0x8c] ss:$16 sps:$4 sm:$0xff]  }
 0x21e   : > { %2945 = vmatpush2.bf16.msra.mxu1 %v4383_v53  ;;  %2986 = vmatpush2.bf16.msra.mxu0 %v4386_v54  ;;  %v4446_v49 = vld [vmem:[#allocation6 + $0x2a8] ss:$16 sps:$4 sm:$0xff]   ;;  %v4454_v53 = vld [vmem:[#allocation6 + $0x28c] ss:$16 sps:$4 sm:$0xff]  }
 0x21f   : > { %2946 = vmatprep.subr.bf16.mxu1 %v4391_v55  ;;  %2987 = vmatprep.subr.bf16.mxu0 %v4394_v56  ;;  %v4449_v54 = vld [vmem:[#allocation6 + $0x88] ss:$16 sps:$4 sm:$0xff]   ;;  %v4457_v55 = vld [vmem:[#allocation6 + $0x6c] ss:$16 sps:$4 sm:$0xff]  }
 0x220   : > { %v4455_v56 = vld [vmem:[#allocation6 + $0x68] ss:$16 sps:$4 sm:$0xff]   ;;  %v4502_v23 = vld [vmem:[#allocation6 + $0x38c] ss:$16 sps:$4 sm:$0xff]  }
 0x221   : > { %v4497_v24 = vld [vmem:[#allocation6 + $0x188] ss:$16 sps:$4 sm:$0xff]   ;;  %v4511_v37 = vld [vmem:[#allocation6 + $0x14c] ss:$16 sps:$4 sm:$0xff]  }
 0x222   : > { %2947 = vmatpush2.bf16.msra.mxu1 %v4389_v59  ;;  %2988 = vmatpush2.bf16.msra.mxu0 %v4392_v60  ;;  %v4458_v59 = vld [vmem:[#allocation6 + $0x268] ss:$16 sps:$4 sm:$0xff]   ;;  %v4463_v60 = vld [vmem:[#allocation6 + $0x4c] ss:$16 sps:$4 sm:$0xff]  }
 0x223   : > { %2948 = vmatprep.subr.bf16.mxu1 %v4397_v63  ;;  %2989 = vmatprep.subr.bf16.mxu0 %v4400_v0  ;;  %v4466_v63 = vld [vmem:[#allocation6 + $0x24c] ss:$16 sps:$4 sm:$0xff]   ;;  %v4461_v0 = vld [vmem:[#allocation6 + $0x48] ss:$16 sps:$4 sm:$0xff]  }
 0x224   : > { %v4506_v30 = vld [vmem:[#allocation6 + $0x368] ss:$16 sps:$4 sm:$0xff]  }
 0x226   : > { %2949 = vmatpush2.bf16.msra.mxu1 %v4395_v1  ;;  %2990 = vmatpush2.bf16.msra.mxu0 %v4398_v2  ;;  %v4464_v1 = vld [vmem:[#allocation6 + $0x248] ss:$16 sps:$4 sm:$0xff]   ;;  %v4469_v2 = vld [vmem:[#allocation6 + $0x2c] ss:$16 sps:$4 sm:$0xff]  }
 0x227   : > { %2950 = vmatprep.subr.bf16.mxu1 %v4403_v3  ;;  %2991 = vmatprep.subr.bf16.mxu0 %v4406_v4  ;;  %v4472_v3 = vld [vmem:[#allocation6 + $0x22c] ss:$16 sps:$4 sm:$0xff]   ;;  %v4467_v4 = vld [vmem:[#allocation6 + $0x28] ss:$16 sps:$4 sm:$0xff]  }
 0x22a   : > { %2951 = vmatpush2.bf16.msra.mxu1 %v4401_v5  ;;  %2992 = vmatpush2.bf16.msra.mxu0 %v4404_v6  ;;  %v4470_v5 = vld [vmem:[#allocation6 + $0x228] ss:$16 sps:$4 sm:$0xff]   ;;  %v4475_v6 = vld [vmem:[#allocation6 + $0xc] ss:$16 sps:$4 sm:$0xff]  }
 0x22b   : > { %2952 = vmatprep.subr.bf16.mxu1 %v4409_v7  ;;  %2993 = vmatprep.subr.bf16.mxu0 %v4412_v8  ;;  %v4478_v7 = vld [vmem:[#allocation6 + $0x20c] ss:$16 sps:$4 sm:$0xff]   ;;  %v4473_v8 = vld [vmem:[#allocation6 + $0x8] ss:$16 sps:$4 sm:$0xff]  }
 0x22e   : > { %2953 = vmatpush2.bf16.msra.mxu1 %v4407_v9  ;;  %2994 = vmatpush2.bf16.msra.mxu0 %v4410_v10  ;;  %v4476_v9 = vld [vmem:[#allocation6 + $0x208] ss:$16 sps:$4 sm:$0xff]   ;;  %v4481_v10 = vld [vmem:[#allocation6 + $0x1ec] ss:$16 sps:$4 sm:$0xff]  }
 0x22f   : > { %2954 = vmatprep.subr.bf16.mxu1 %v4415_v13  ;;  %2995 = vmatprep.subr.bf16.mxu0 %v4418_v14  ;;  %v4482_v13 = vld [vmem:[#allocation6 + $0x3e8] ss:$16 sps:$4 sm:$0xff]   ;;  %v4487_v14 = vld [vmem:[#allocation6 + $0x1cc] ss:$16 sps:$4 sm:$0xff]  }
 0x232   : > { %2955 = vmatpush2.bf16.msra.mxu1 %v4413_v15  ;;  %2996 = vmatpush2.bf16.msra.mxu0 %v4416_v16  ;;  %v4490_v15 = vld [vmem:[#allocation6 + $0x3cc] ss:$16 sps:$4 sm:$0xff]   ;;  %v4485_v16 = vld [vmem:[#allocation6 + $0x1c8] ss:$16 sps:$4 sm:$0xff]  }
 0x233   : > { %2956 = vmatprep.subr.bf16.mxu1 %v4421_v19  ;;  %2997 = vmatprep.subr.bf16.mxu0 %v4424_v20  ;;  %v4496_v19 = vld [vmem:[#allocation6 + $0x3ac] ss:$16 sps:$4 sm:$0xff]   ;;  %v4491_v20 = vld [vmem:[#allocation6 + $0x1a8] ss:$16 sps:$4 sm:$0xff]  }
 0x236   : > { %2957 = vmatpush2.bf16.msra.mxu1 %v4419_v21  ;;  %2998 = vmatpush2.bf16.msra.mxu0 %v4422_v22  ;;  %v4494_v21 = vld [vmem:[#allocation6 + $0x3a8] ss:$16 sps:$4 sm:$0xff]   ;;  %v4499_v22 = vld [vmem:[#allocation6 + $0x18c] ss:$16 sps:$4 sm:$0xff]  }
 0x237   : > { %2958 = vmatprep.subr.bf16.mxu1 %v4427_v25  ;;  %2999 = vmatprep.subr.bf16.mxu0 %v4430_v26  ;;  %v4500_v25 = vld [vmem:[#allocation6 + $0x388] ss:$16 sps:$4 sm:$0xff]   ;;  %v4505_v26 = vld [vmem:[#allocation6 + $0x16c] ss:$16 sps:$4 sm:$0xff]  }
 0x23a   : > { %2959 = vmatpush2.bf16.msra.mxu1 %v4425_v29  ;;  %3000 = vmatpush2.bf16.msra.mxu0 %v4428_v34  ;;  %v4508_v29 = vld [vmem:[#allocation6 + $0x36c] ss:$16 sps:$4 sm:$0xff]   ;;  %v4503_v34 = vld [vmem:[#allocation6 + $0x168] ss:$16 sps:$4 sm:$0xff]  }
 0x23b   : > { %3010 = vmatprep.subr.bf16.mxu1 %v4433_v38  ;;  %3051 = vmatprep.subr.bf16.mxu0 %v4436_v40  ;;  %v4514_v38 = vld [vmem:[#allocation6 + $0x34c] ss:$16 sps:$4 sm:$0xff]   ;;  %v4509_v40 = vld [vmem:[#allocation6 + $0x148] ss:$16 sps:$4 sm:$0xff]  }
 0x23d   : > { %2961 = vmatmul.mubr.bf16.vlgmr.msra.gmra.mxu1 %v5065_v27  ;;  %3002 = vmatmul.mubr.bf16.vlgmr.msra.gmra.mxu0 %v5067_v28 }
 0x23e   : > { %3011 = vmatpush1.bf16.msra.mxu1 %v4431_v41  ;;  %3042 = vmatprep.mubr.bf16.mxu1 %v5033_v57  ;;  %v4452_v57 = vld [vmem:[#allocation6 + $0x288] ss:$16 sps:$4 sm:$0xff]  }
 0x23f   : > { %3052 = vmatpush1.bf16.msra.mxu0 %v4434_v42  ;;  %3083 = vmatprep.mubr.bf16.mxu0 %v5035_v58  ;;  %v4460_v58 = vld [vmem:[#allocation6 + $0x26c] ss:$16 sps:$4 sm:$0xff]   ;;  %v4512_v41 = vld [vmem:[#allocation6 + $0x348] ss:$16 sps:$4 sm:$0xff]  }
 0x240   : > { %3012 = vmatprep.subr.bf16.mxu1 %v4439_v43  ;;  %3053 = vmatprep.subr.bf16.mxu0 %v4442_v39  ;;  %v4517_v42 = vld [vmem:[#allocation6 + $0x12c] ss:$16 sps:$4 sm:$0xff]   ;;  %v4515_v39 = vld [vmem:[#allocation6 + $0x128] ss:$16 sps:$4 sm:$0xff]  }
 0x241   : > { %v4520_v43 = vld [vmem:[#allocation6 + $0x32c] ss:$16 sps:$4 sm:$0xff]  }
 0x242   : > { %3013 = vmatpush1.bf16.msra.mxu1 %v4437_v44  ;;  %v4518_v44 = vld [vmem:[#allocation6 + $0x328] ss:$16 sps:$4 sm:$0xff]  }
 0x243   : > { %3054 = vmatpush1.bf16.msra.mxu0 %v4440_v45  ;;  %3014 = vmatprep.subr.bf16.mxu1 %v4445_v46  ;;  %v4523_v45 = vld [vmem:[#allocation6 + $0x10c] ss:$16 sps:$4 sm:$0xff]  }
 0x244   : > { %3055 = vmatprep.subr.bf16.mxu0 %v4448_v47  ;;  %v4526_v46 = vld [vmem:[#allocation6 + $0x30c] ss:$16 sps:$4 sm:$0xff]   ;;  %v4521_v47 = vld [vmem:[#allocation6 + $0x108] ss:$16 sps:$4 sm:$0xff]  }
 0x246   : > { %3015 = vmatpush1.bf16.msra.mxu1 %v4443_v48  ;;  %v4524_v48 = vld [vmem:[#allocation6 + $0x308] ss:$16 sps:$4 sm:$0xff]  }
 0x247   : > { %3056 = vmatpush1.bf16.msra.mxu0 %v4446_v49  ;;  %3016 = vmatprep.subr.bf16.mxu1 %v4451_v50  ;;  %v4529_v49 = vld [vmem:[#allocation6 + $0x4ec] ss:$16 sps:$4 sm:$0xff]  }
 0x248   : > { %3057 = vmatprep.subr.bf16.mxu0 %v4454_v53  ;;  %v4532_v50 = vld [vmem:[#allocation6 + $0x6ec] ss:$16 sps:$4 sm:$0xff]   ;;  %v4527_v53 = vld [vmem:[#allocation6 + $0x4e8] ss:$16 sps:$4 sm:$0xff]  }
 0x24a   : > { %3017 = vmatpush1.bf16.msra.mxu1 %v4449_v54  ;;  %v4530_v54 = vld [vmem:[#allocation6 + $0x6e8] ss:$16 sps:$4 sm:$0xff]  }
 0x24b   : > { %3058 = vmatpush1.bf16.msra.mxu0 %v4452_v57  ;;  %3018 = vmatprep.subr.bf16.mxu1 %v4457_v55  ;;  %v4535_v57 = vld [vmem:[#allocation6 + $0x4cc] ss:$16 sps:$4 sm:$0xff]  }
 0x24c   : > { %3059 = vmatprep.subr.bf16.mxu0 %v4460_v58  ;;  %v4538_v55 = vld [vmem:[#allocation6 + $0x6cc] ss:$16 sps:$4 sm:$0xff]   ;;  %v4533_v58 = vld [vmem:[#allocation6 + $0x4c8] ss:$16 sps:$4 sm:$0xff]  }
 0x24e   : > { %3019 = vmatpush1.bf16.msra.mxu1 %v4455_v56  ;;  %v4536_v56 = vld [vmem:[#allocation6 + $0x6c8] ss:$16 sps:$4 sm:$0xff]  }
 0x24f   : > { %3060 = vmatpush1.bf16.msra.mxu0 %v4458_v59  ;;  %3020 = vmatprep.subr.bf16.mxu1 %v4463_v60  ;;  %v4541_v59 = vld [vmem:[#allocation6 + $0x4ac] ss:$16 sps:$4 sm:$0xff]  }
 0x250   : > { %3061 = vmatprep.subr.bf16.mxu0 %v4466_v63  ;;  %v4544_v60 = vld [vmem:[#allocation6 + $0x6ac] ss:$16 sps:$4 sm:$0xff]   ;;  %v4539_v63 = vld [vmem:[#allocation6 + $0x4a8] ss:$16 sps:$4 sm:$0xff]  }
 0x252   : > { %3021 = vmatpush1.bf16.msra.mxu1 %v4461_v0  ;;  %v4547_v0 = vld [vmem:[#allocation6 + $0x48c] ss:$16 sps:$4 sm:$0xff]  }
 0x253   : > { %3062 = vmatpush1.bf16.msra.mxu0 %v4464_v1  ;;  %3022 = vmatprep.subr.bf16.mxu1 %v4469_v2  ;;  %v4545_v1 = vld [vmem:[#allocation6 + $0x488] ss:$16 sps:$4 sm:$0xff]   ;;  %v4553_v2 = vld [vmem:[#allocation6 + $0x46c] ss:$16 sps:$4 sm:$0xff]  }
 0x254   : > { %3063 = vmatprep.subr.bf16.mxu0 %v4472_v3  ;;  %v4556_v3 = vld [vmem:[#allocation6 + $0x66c] ss:$16 sps:$4 sm:$0xff]  }
 0x256   : > { %3023 = vmatpush1.bf16.msra.mxu1 %v4467_v4  ;;  %v4554_v4 = vld [vmem:[#allocation6 + $0x668] ss:$16 sps:$4 sm:$0xff]  }
 0x257   : > { %3064 = vmatpush1.bf16.msra.mxu0 %v4470_v5  ;;  %3024 = vmatprep.subr.bf16.mxu1 %v4475_v6  ;;  %v4559_v5 = vld [vmem:[#allocation6 + $0x44c] ss:$16 sps:$4 sm:$0xff]  }
 0x258   : > { %3065 = vmatprep.subr.bf16.mxu0 %v4478_v7  ;;  %v4562_v6 = vld [vmem:[#allocation6 + $0x64c] ss:$16 sps:$4 sm:$0xff]   ;;  %v4557_v7 = vld [vmem:[#allocation6 + $0x448] ss:$16 sps:$4 sm:$0xff]  }
 0x25a   : > { %3025 = vmatpush1.bf16.msra.mxu1 %v4473_v8  ;;  %v4560_v8 = vld [vmem:[#allocation6 + $0x648] ss:$16 sps:$4 sm:$0xff]  }
 0x25b   : > { %3066 = vmatpush1.bf16.msra.mxu0 %v4476_v9  ;;  %3026 = vmatprep.subr.bf16.mxu1 %v4481_v10  ;;  %v4565_v9 = vld [vmem:[#allocation6 + $0x42c] ss:$16 sps:$4 sm:$0xff]  }
 0x25c   : > { %3067 = vmatprep.subr.bf16.mxu0 %v4484_v11  ;;  %v4568_v10 = vld [vmem:[#allocation6 + $0x62c] ss:$16 sps:$4 sm:$0xff]   ;;  %v4563_v11 = vld [vmem:[#allocation6 + $0x428] ss:$16 sps:$4 sm:$0xff]  }
 0x25e   : > { %3027 = vmatpush2.bf16.msra.mxu1 %v4479_v12  ;;  %v4566_v12 = vld [vmem:[#allocation6 + $0x628] ss:$16 sps:$4 sm:$0xff]  }
 0x25f   : > { %3068 = vmatpush2.bf16.msra.mxu0 %v4482_v13  ;;  %3028 = vmatprep.subr.bf16.mxu1 %v4487_v14  ;;  %v4571_v13 = vld [vmem:[#allocation6 + $0x40c] ss:$16 sps:$4 sm:$0xff]  }
 0x260   : > { %3069 = vmatprep.subr.bf16.mxu0 %v4490_v15  ;;  %v4574_v14 = vld [vmem:[#allocation6 + $0x60c] ss:$16 sps:$4 sm:$0xff]   ;;  %v4569_v15 = vld [vmem:[#allocation6 + $0x408] ss:$16 sps:$4 sm:$0xff]  }
 0x262   : > { %3029 = vmatpush2.bf16.msra.mxu1 %v4485_v16  ;;  %v4572_v16 = vld [vmem:[#allocation6 + $0x608] ss:$16 sps:$4 sm:$0xff]  }
 0x263   : > { %3070 = vmatpush2.bf16.msra.mxu0 %v4488_v17  ;;  %3030 = vmatprep.subr.bf16.mxu1 %v4493_v18  ;;  %v4577_v17 = vld [vmem:[#allocation6 + $0x5ec] ss:$16 sps:$4 sm:$0xff]  }
 0x264   : > { %3071 = vmatprep.subr.bf16.mxu0 %v4496_v19  ;;  %v4580_v18 = vld [vmem:[#allocation6 + $0x7ec] ss:$16 sps:$4 sm:$0xff]   ;;  %v4575_v19 = vld [vmem:[#allocation6 + $0x5e8] ss:$16 sps:$4 sm:$0xff]  }
 0x266   : > { %3031 = vmatpush2.bf16.msra.mxu1 %v4491_v20  ;;  %v4578_v20 = vld [vmem:[#allocation6 + $0x7e8] ss:$16 sps:$4 sm:$0xff]  }
 0x267   : > { %3072 = vmatpush2.bf16.msra.mxu0 %v4494_v21  ;;  %3032 = vmatprep.subr.bf16.mxu1 %v4499_v22  ;;  %v4583_v21 = vld [vmem:[#allocation6 + $0x5cc] ss:$16 sps:$4 sm:$0xff]  }
 0x268   : > { %3073 = vmatprep.subr.bf16.mxu0 %v4502_v23  ;;  %v4586_v22 = vld [vmem:[#allocation6 + $0x7cc] ss:$16 sps:$4 sm:$0xff]   ;;  %v4581_v23 = vld [vmem:[#allocation6 + $0x5c8] ss:$16 sps:$4 sm:$0xff]  }
 0x26a   : > { %3033 = vmatpush2.bf16.msra.mxu1 %v4497_v24  ;;  %v4584_v24 = vld [vmem:[#allocation6 + $0x7c8] ss:$16 sps:$4 sm:$0xff]  }
 0x26b   : > { %3074 = vmatpush2.bf16.msra.mxu0 %v4500_v25  ;;  %3034 = vmatprep.subr.bf16.mxu1 %v4505_v26  ;;  %v4589_v25 = vld [vmem:[#allocation6 + $0x5ac] ss:$16 sps:$4 sm:$0xff]  }
 0x26c   : > { %3075 = vmatprep.subr.bf16.mxu0 %v4508_v29  ;;  %v4592_v26 = vld [vmem:[#allocation6 + $0x7ac] ss:$16 sps:$4 sm:$0xff]   ;;  %v4587_v29 = vld [vmem:[#allocation6 + $0x5a8] ss:$16 sps:$4 sm:$0xff]  }
 0x26e   : > { %3035 = vmatpush2.bf16.msra.mxu1 %v4503_v34  ;;  %v4590_v34 = vld [vmem:[#allocation6 + $0x7a8] ss:$16 sps:$4 sm:$0xff]  }
 0x26f   : > { %3076 = vmatpush2.bf16.msra.mxu0 %v4506_v30  ;;  %3036 = vmatprep.subr.bf16.mxu1 %v4511_v37  ;;  %v4595_v30 = vld [vmem:[#allocation6 + $0x58c] ss:$16 sps:$4 sm:$0xff]  }
 0x270   : > { %3077 = vmatprep.subr.bf16.mxu0 %v4514_v38  ;;  %v4598_v37 = vld [vmem:[#allocation6 + $0x78c] ss:$16 sps:$4 sm:$0xff]   ;;  %v4593_v38 = vld [vmem:[#allocation6 + $0x588] ss:$16 sps:$4 sm:$0xff]  }
 0x272   : > { %3037 = vmatpush2.bf16.msra.mxu1 %v4509_v40  ;;  %v4596_v40 = vld [vmem:[#allocation6 + $0x788] ss:$16 sps:$4 sm:$0xff]  }
 0x273   : > { %3078 = vmatpush2.bf16.msra.mxu0 %v4512_v41  ;;  %3038 = vmatprep.subr.bf16.mxu1 %v4517_v42  ;;  %v4601_v41 = vld [vmem:[#allocation6 + $0x56c] ss:$16 sps:$4 sm:$0xff]  }
 0x274   : > { %3079 = vmatprep.subr.bf16.mxu0 %v4520_v43  ;;  %v4604_v42 = vld [vmem:[#allocation6 + $0x76c] ss:$16 sps:$4 sm:$0xff]   ;;  %v4599_v43 = vld [vmem:[#allocation6 + $0x568] ss:$16 sps:$4 sm:$0xff]  }
 0x276   : > { %3039 = vmatpush2.bf16.msra.mxu1 %v4515_v39  ;;  %v4602_v39 = vld [vmem:[#allocation6 + $0x768] ss:$16 sps:$4 sm:$0xff]  }
 0x277   : > { %3080 = vmatpush2.bf16.msra.mxu0 %v4518_v44  ;;  %3040 = vmatprep.subr.bf16.mxu1 %v4523_v45  ;;  %v4607_v44 = vld [vmem:[#allocation6 + $0x54c] ss:$16 sps:$4 sm:$0xff]  }
 0x278   : > { %3081 = vmatprep.subr.bf16.mxu0 %v4526_v46  ;;  %v4610_v45 = vld [vmem:[#allocation6 + $0x74c] ss:$16 sps:$4 sm:$0xff]   ;;  %v4605_v46 = vld [vmem:[#allocation6 + $0x548] ss:$16 sps:$4 sm:$0xff]  }
 0x27a   : > { %3041 = vmatpush2.bf16.msra.mxu1 %v4521_v47  ;;  %v4608_v47 = vld [vmem:[#allocation6 + $0x748] ss:$16 sps:$4 sm:$0xff]  }
 0x27b   : > { %3082 = vmatpush2.bf16.msra.mxu0 %v4524_v48  ;;  %3092 = vmatprep.subr.bf16.mxu1 %v4529_v49  ;;  %v4613_v48 = vld [vmem:[#allocation6 + $0x52c] ss:$16 sps:$4 sm:$0xff]  }
 0x27c   : > { %3133 = vmatprep.subr.bf16.mxu0 %v4532_v50  ;;  %v4616_v49 = vld [vmem:[#allocation6 + $0x72c] ss:$16 sps:$4 sm:$0xff]   ;;  %v4611_v50 = vld [vmem:[#allocation6 + $0x528] ss:$16 sps:$4 sm:$0xff]  }
 0x27d   : > { %3043 = vmatmul.mubr.bf16.vlgmr.msra.gmra.mxu1 %v5037_v61  ;;  %v4542_v61 = vld [vmem:[#allocation6 + $0x6a8] ss:$16 sps:$4 sm:$0xff]  }
 0x27e   : > { %3084 = vmatmul.mubr.bf16.vlgmr.msra.gmra.mxu0 %v5039_v62  ;;  %3093 = vmatpush1.bf16.msra.mxu1 %v4527_v53  ;;  %v4550_v62 = vld [vmem:[#allocation6 + $0x68c] ss:$16 sps:$4 sm:$0xff]   ;;  %v4614_v53 = vld [vmem:[#allocation6 + $0x728] ss:$16 sps:$4 sm:$0xff]  }
 0x27f   : > { %3124 = vmatprep.mubr.bf16.mxu1 %v5053_v51  ;;  %3134 = vmatpush1.bf16.msra.mxu0 %v4530_v54  ;;  %v4548_v51 = vld [vmem:[#allocation6 + $0x688] ss:$16 sps:$4 sm:$0xff]   ;;  %v4619_v54 = vld [vmem:[#allocation6 + $0x50c] ss:$16 sps:$4 sm:$0xff]  }
 0x280   : > { %3165 = vmatprep.mubr.bf16.mxu0 %v5055_v52  ;;  %3094 = vmatprep.subr.bf16.mxu1 %v4535_v57  ;;  %v4551_v52 = vld [vmem:[#allocation6 + $0x468] ss:$16 sps:$4 sm:$0xff]   ;;  %v4622_v57 = vld [vmem:[#allocation6 + $0x70c] ss:$16 sps:$4 sm:$0xff]  }
 0x281   : > { %3135 = vmatprep.subr.bf16.mxu0 %v4538_v55  ;;  %v4617_v55 = vld [vmem:[#allocation6 + $0x508] ss:$16 sps:$4 sm:$0xff]  }
 0x282   : > { %3095 = vmatpush1.bf16.msra.mxu1 %v4533_v58  ;;  %v4620_v58 = vld [vmem:[#allocation6 + $0x708] ss:$16 sps:$4 sm:$0xff]  }
 0x283   : > { %3136 = vmatpush1.bf16.msra.mxu0 %v4536_v56  ;;  %3096 = vmatprep.subr.bf16.mxu1 %v4541_v59  ;;  %v4623_v56 = vld [vmem:[%s5218_s7 + $0x78] sm:$0xff]  }
 0x284   : > { %3137 = vmatprep.subr.bf16.mxu0 %v4544_v60  ;;  %v4624_v59 = vld [vmem:[%s5218_s7 + $0x38] sm:$0xff]   ;;  %v4625_v60 = vld [vmem:[%s5218_s7 + $0x70] sm:$0xff]  }
 0x286   : > { %3097 = vmatpush1.bf16.msra.mxu1 %v4539_v63 }
 0x287   : > { %3138 = vmatpush1.bf16.msra.mxu0 %v4542_v61  ;;  %3098 = vmatprep.subr.bf16.mxu1 %v4547_v0  ;;  %v4626_v0 = vld [vmem:[%s5218_s7 + $0x30] sm:$0xff]  }
 0x288   : > { %3139 = vmatprep.subr.bf16.mxu0 %v4550_v62 }
 0x28a   : > { %3099 = vmatpush1.bf16.msra.mxu1 %v4545_v1 }
 0x28b   : > { %3140 = vmatpush1.bf16.msra.mxu0 %v4548_v51  ;;  %3100 = vmatprep.subr.bf16.mxu1 %v4553_v2  ;;  %v4627_v51 = vld [vmem:[%s5218_s7 + $0x68] sm:$0xff]  }
 0x28c   : > { %3141 = vmatprep.subr.bf16.mxu0 %v4556_v3 }
 0x28e   : > { %3101 = vmatpush1.bf16.msra.mxu1 %v4551_v52 }
 0x28f   : > { %3142 = vmatpush1.bf16.msra.mxu0 %v4554_v4  ;;  %3102 = vmatprep.subr.bf16.mxu1 %v4559_v5  ;;  %v4629_v4 = vld [vmem:[%s5218_s7 + $0x60] sm:$0xff]   ;;  %v4639_v5 = vld [vmem:[%s5218_s7 + $0xf8] sm:$0xff]  }
 0x290   : > { %3143 = vmatprep.subr.bf16.mxu0 %v4562_v6  ;;  %v4640_v6 = vld [vmem:[%s5218_s7 + $0xb8] sm:$0xff]  }
 0x292   : > { %3103 = vmatpush1.bf16.msra.mxu1 %v4557_v7  ;;  %v4641_v7 = vld [vmem:[%s5218_s7 + $0xf0] sm:$0xff]  }
 0x293   : > { %3144 = vmatpush1.bf16.msra.mxu0 %v4560_v8  ;;  %3104 = vmatprep.subr.bf16.mxu1 %v4565_v9  ;;  %v4630_v8 = vld [vmem:[%s5218_s7 + $0x20] sm:$0xff]   ;;  %v4631_v9 = vld [vmem:[%s5218_s7 + $0x58] sm:$0xff]  }
 0x294   : > { %3145 = vmatprep.subr.bf16.mxu0 %v4568_v10  ;;  %v4642_v10 = vld [vmem:[%s5218_s7 + $0xb0] sm:$0xff]  }
 0x296   : > { %3105 = vmatpush1.bf16.msra.mxu1 %v4563_v11  ;;  %v4643_v11 = vld [vmem:[%s5218_s7 + $0xe8] sm:$0xff]  }
 0x297   : > { %3146 = vmatpush1.bf16.msra.mxu0 %v4566_v12  ;;  %3106 = vmatprep.subr.bf16.mxu1 %v4571_v13  ;;  %v4632_v12 = vld [vmem:[%s5218_s7 + $0x18] sm:$0xff]   ;;  %v4633_v13 = vld [vmem:[%s5218_s7 + $0x50] sm:$0xff]  }
 0x298   : > { %3147 = vmatprep.subr.bf16.mxu0 %v4574_v14  ;;  %v4644_v14 = vld [vmem:[%s5218_s7 + $0xa8] sm:$0xff]  }
 0x29a   : > { %3107 = vmatpush1.bf16.msra.mxu1 %v4569_v15  ;;  %v4645_v15 = vld [vmem:[%s5218_s7 + $0xe0] sm:$0xff]  }
 0x29b   : > { %3148 = vmatpush1.bf16.msra.mxu0 %v4572_v16  ;;  %3108 = vmatprep.subr.bf16.mxu1 %v4577_v17  ;;  %v4634_v16 = vld [vmem:[%s5218_s7 + $0x10] sm:$0xff]   ;;  %v4635_v17 = vld [vmem:[%s5218_s7 + $0x48] sm:$0xff]  }
 0x29c   : > { %3149 = vmatprep.subr.bf16.mxu0 %v4580_v18  ;;  %v4646_v18 = vld [vmem:[%s5218_s7 + $0xa0] sm:$0xff]  }
 0x29e   : > { %3109 = vmatpush2.bf16.msra.mxu1 %v4575_v19  ;;  %v4647_v19 = vld [vmem:[%s5218_s7 + $0xd8] sm:$0xff]  }
 0x29f   : > { %3150 = vmatpush2.bf16.msra.mxu0 %v4578_v20  ;;  %3110 = vmatprep.subr.bf16.mxu1 %v4583_v21  ;;  %v4636_v20 = vld [vmem:[%s5218_s7 + $0x8] sm:$0xff]   ;;  %v4637_v21 = vld [vmem:[%s5218_s7 + $0x40] sm:$0xff]  }
 0x2a0   : > { %3151 = vmatprep.subr.bf16.mxu0 %v4586_v22  ;;  %v4648_v22 = vld [vmem:[%s5218_s7 + $0x98] sm:$0xff]  }
 0x2a2   : > { %3111 = vmatpush2.bf16.msra.mxu1 %v4581_v23  ;;  %v4638_v23 = vld [vmem:[%s5218_s7] sm:$0xff]  }
 0x2a3   : > { %3152 = vmatpush2.bf16.msra.mxu0 %v4584_v24  ;;  %3112 = vmatprep.subr.bf16.mxu1 %v4589_v25  ;;  %v1544_v24 = vld [vmem:[%s5217_s6] sm:$0xf] }
 0x2a4   : > { %3153 = vmatprep.subr.bf16.mxu0 %v4592_v26  ;;  %v1549_v25 = vrot.slane %v1544_v24, %v750_v32  ;;  %v1553_v26 = vrot.slane %v1544_v24, %v754_v35 }
 0x2a6   : > { %3113 = vmatpush2.bf16.msra.mxu1 %v4587_v29 }
 0x2a7   : > { %3154 = vmatpush2.bf16.msra.mxu0 %v4590_v34  ;;  %3114 = vmatprep.subr.bf16.mxu1 %v4595_v30 }
 0x2a8   : > { %3155 = vmatprep.subr.bf16.mxu0 %v4598_v37 }
 0x2aa   : > { %3115 = vmatpush2.bf16.msra.mxu1 %v4593_v38 }
 0x2ab   : > { %3156 = vmatpush2.bf16.msra.mxu0 %v4596_v40  ;;  %3116 = vmatprep.subr.bf16.mxu1 %v4601_v41  ;;  %v4649_v40 = vld [vmem:[%s5218_s7 + $0xd0] sm:$0xff]  }
 0x2ac   : > { %3157 = vmatprep.subr.bf16.mxu0 %v4604_v42 }
 0x2ae   : > { %3117 = vmatpush2.bf16.msra.mxu1 %v4599_v43  ;;  %v4650_v43 = vld [vmem:[%s5218_s7 + $0x90] sm:$0xff]  }
 0x2af   : > { %3158 = vmatpush2.bf16.msra.mxu0 %v4602_v39  ;;  %3118 = vmatprep.subr.bf16.mxu1 %v4607_v44 }
 0x2b0   : > { %3159 = vmatprep.subr.bf16.mxu0 %v4610_v45 }
 0x2b2   : > { %3119 = vmatpush2.bf16.msra.mxu1 %v4605_v46 }
 0x2b3   : > { %3160 = vmatpush2.bf16.msra.mxu0 %v4608_v47  ;;  %3120 = vmatprep.subr.bf16.mxu1 %v4613_v48  ;;  %v4651_v47 = vld [vmem:[%s5218_s7 + $0xc8] sm:$0xff]  }
 0x2b4   : > { %3161 = vmatprep.subr.bf16.mxu0 %v4616_v49  ;;  %v4652_v49 = vld [vmem:[%s5218_s7 + $0x88] sm:$0xff]  }
 0x2b6   : > { %3121 = vmatpush2.bf16.msra.mxu1 %v4611_v50 }
 0x2b7   : > { %3162 = vmatpush2.bf16.msra.mxu0 %v4614_v53  ;;  %3122 = vmatprep.subr.bf16.mxu1 %v4619_v54 }
 0x2b8   : > { %3163 = vmatprep.subr.bf16.mxu0 %v4622_v57 }
 0x2ba   : > { %3123 = vmatpush2.bf16.msra.mxu1 %v4617_v55  ;;  %v4653_v55 = vld [vmem:[%s5218_s7 + $0xc0] sm:$0xff]  }
 0x2bb   : > { %3164 = vmatpush2.bf16.msra.mxu0 %v4620_v58  ;;  %4094 = vmatprep.subr.bf16.mxu1 %v4623_v56  ;;  %v4654_v56 = vld [vmem:[%s5218_s7 + $0x80] sm:$0xff]  }
 0x2bc   : > { %4116 = vmatprep.subr.bf16.mxu0 %v4639_v5 }
 0x2bd   : > { %3125 = vmatmul.mubr.bf16.vlgmr.msra.gmra.mxu1 %v5065_v27  ;;  %v2880_v63 = vpop.f32.mrf.mxu1  ;;  %v2921_v61 = vpop.f32.mrf.mxu0  ;;  %v4628_v27 = vld [vmem:[%s5218_s7 + $0x28] sm:$0xff]  }
 0x2be   : > { %3166 = vmatmul.mubr.bf16.vlgmr.msra.gmra.mxu0 %v5067_v28  ;;  %4095 = vmatpush3.bf16.msra.mxu1 %v4624_v59  ;;  %v2881_v29 = vadd.f32 %v2880_v63, %v1549_v25 }
 0x2bf   : > { %v2882_v62 = vpop.f32.mrf.mxu1  ;;  %v2923_v1 = vpop.f32.mrf.mxu0  ;;  %4096 = vmatprep.subr.bf16.mxu1 %v4625_v60  ;;  %4117 = vmatpush3.bf16.msra.mxu0 %v4640_v6 }
 0x2c0   : > { %4118 = vmatprep.subr.bf16.mxu0 %v4641_v7  ;;  %v2883_v34 = vadd.f32 %v2882_v62, %v1553_v26  ;;  %v2922_v30 = vadd.f32 %v2921_v61, %v2881_v29 }
 0x2c1   : > { %v2884_v2 = vpop.f32.mrf.mxu1  ;;  %v2925_v3 = vpop.f32.mrf.mxu0 }
 0x2c2   : > { %4097 = vmatpush3.bf16.msra.mxu1 %v4626_v0  ;;  %v2924_v41 = vadd.f32 %v2923_v1, %v2883_v34  ;;  %v1557_v3 = vrot.slane %v1544_v24, %v758_v33 }
 0x2c3   : > { %v2885_v28 = vpop.f32.mrf.mxu1  ;;  %v2926_v52 = vpop.f32.mrf.mxu0  ;;  %4098 = vmatprep.subr.bf16.mxu1 %v4627_v51  ;;  %4119 = vmatpush3.bf16.msra.mxu0 %v4642_v10 }
 0x2c4   : > { %4120 = vmatprep.subr.bf16.mxu0 %v4643_v11 }
 0x2c6   : > { %4099 = vmatpush3.bf16.msra.mxu1 %v4628_v27  ;;  %v1561_v27 = vrot.slane %v1544_v24, %v762_v36  ;;  %v4035_v24 = vld [vmem:[%s5219_s8] ss:$0 sm:$0xff] }
 0x2c7   : > { %4100 = vmatprep.subr.bf16.mxu1 %v4629_v4  ;;  %4121 = vmatpush3.bf16.msra.mxu0 %v4644_v14 }
 0x2c8   : > { %4122 = vmatprep.subr.bf16.mxu0 %v4645_v15 }
 0x2ca   : > { %4101 = vmatpush3.bf16.msra.mxu1 %v4630_v8 }
 0x2cb   : > { %4102 = vmatprep.subr.bf16.mxu1 %v4631_v9  ;;  %4123 = vmatpush3.bf16.msra.mxu0 %v4646_v18 }
 0x2cc   : > { %4124 = vmatprep.subr.bf16.mxu0 %v4647_v19 }
 0x2ce   : > { %4103 = vmatpush3.bf16.msra.mxu1 %v4632_v12 }
 0x2cf   : > { %4104 = vmatprep.subr.bf16.mxu1 %v4633_v13  ;;  %4125 = vmatpush3.bf16.msra.mxu0 %v4648_v22 }
 0x2d0   : > { %4126 = vmatprep.subr.bf16.mxu0 %v4649_v40 }
 0x2d2   : > { %4105 = vmatpush3.bf16.msra.mxu1 %v4634_v16 }
 0x2d3   : > { %4106 = vmatprep.subr.bf16.mxu1 %v4635_v17  ;;  %4127 = vmatpush3.bf16.msra.mxu0 %v4650_v43 }
 0x2d4   : > { %4128 = vmatprep.subr.bf16.mxu0 %v4651_v47 }
 0x2d6   : > { %4107 = vmatpush3.bf16.msra.mxu1 %v4636_v20 }
 0x2d7   : > { %4108 = vmatprep.subr.bf16.mxu1 %v4637_v21  ;;  %4129 = vmatpush3.bf16.msra.mxu0 %v4652_v49 }
 0x2d8   : > { %4130 = vmatprep.subr.bf16.mxu0 %v4653_v55 }
 0x2da   : > { %4109 = vmatpush3.bf16.msra.mxu1 %v4638_v23 }
 0x2db   : > { %4131 = vmatpush3.bf16.msra.mxu0 %v4654_v56 }
 0x2fd   : > { %v2962_v37 = vpop.f32.mrf.mxu1  ;;  %v3003_v38 = vpop.f32.mrf.mxu0 }
 0x2fe   : > { %v2963_v42 = vadd.f32 %v2962_v37, %v2922_v30 }
 0x2ff   : > { %v2964_v39 = vpop.f32.mrf.mxu1  ;;  %v3005_v32 = vpop.f32.mrf.mxu0 }
 0x300   : > { %v3004_v44 = vadd.f32 %v3003_v38, %v2963_v42  ;;  %v2965_v35 = vadd.f32 %v2964_v39, %v2924_v41 }
 0x301   : > { %v2966_v45 = vpop.f32.mrf.mxu1  ;;  %v3007_v46 = vpop.f32.mrf.mxu0 }
 0x302   : > { %v3006_v48 = vadd.f32 %v3005_v32, %v2965_v35  ;;  %v3174_v50 = vmax.f32 %v3004_v44, 0.0 }
 0x303   : > { %v2967_v53 = vpop.f32.mrf.mxu1  ;;  %v3008_v54 = vpop.f32.mrf.mxu0 }
 0x304   : > { %v3175_v57 = vmax.f32 %v3006_v48, 0.0  ;;  %v3178_v59 = vpack.c.bf16 %v3174_v50, %v3174_v50 }
 0x306   : > { %v3179_v58 = vpack.c.bf16 %v3175_v57, %v3175_v57 }
 0x308   : > { %3477 = vmatprep.mubr.bf16.mxu1 %v3179_v58 }
 0x309   : > { %3478 = vmatmul.mubr.bf16.vlgmr.msra.gmra.mxu1 %v3178_v59 }
 0x33d   : > { %v3044_v60 = vpop.f32.mrf.mxu1 }
 0x33e   : > { %v3085_v63 = vpop.f32.mrf.mxu0  ;;  %v3045_v28 = vadd.f32 %v3044_v60, %v1557_v3 }
 0x33f   : > { %v3046_v61 = vpop.f32.mrf.mxu1 }
 0x340   : > { %v3087_v0 = vpop.f32.mrf.mxu0  ;;  %v3047_v52 = vadd.f32 %v3046_v61, %v1561_v27  ;;  %v3086_v4 = vadd.f32 %v3085_v63, %v3045_v28 }
 0x341   : > { %v3048_v62 = vpop.f32.mrf.mxu1 }
 0x342   : > { %v3089_v1 = vpop.f32.mrf.mxu0  ;;  %v3088_v6 = vadd.f32 %v3087_v0, %v3047_v52 }
 0x343   : > { %v3049_v51 = vpop.f32.mrf.mxu1 }
 0x344   : > { %v3090_v2 = vpop.f32.mrf.mxu0 }
 0x37d   : > { %v3126_v5 = vpop.f32.mrf.mxu1 }
 0x37e   : > { %v3127_v7 = vadd.f32 %v3126_v5, %v3086_v4  ;;  %v3167_v8 = vpop.f32.mrf.mxu0 }
 0x37f   : > { %v3128_v9 = vpop.f32.mrf.mxu1 }
 0x380   : > { %v3168_v10 = vadd.f32 %v3167_v8, %v3127_v7  ;;  %v3129_v11 = vadd.f32 %v3128_v9, %v3088_v6  ;;  %v3169_v12 = vpop.f32.mrf.mxu0 }
 0x381   : > { %v3130_v13 = vpop.f32.mrf.mxu1 }
 0x382   : > { %v3170_v14 = vadd.f32 %v3169_v12, %v3129_v11  ;;  %v3171_v15 = vpop.f32.mrf.mxu0  ;;  %v3176_v16 = vmax.f32 %v3168_v10, 0.0 }
 0x383   : > { %v3131_v17 = vpop.f32.mrf.mxu1 }
 0x384   : > { %v3177_v33 = vmax.f32 %v3170_v14, 0.0  ;;  %v3172_v31 = vpop.f32.mrf.mxu0  ;;  %v3180_v18 = vpack.c.bf16 %v3176_v16, %v3176_v16 }
 0x386   : > { %v3181_v36 = vpack.c.bf16 %v3177_v33, %v3177_v33 }
 0x388   : > { %3517 = vmatprep.mubr.bf16.mxu0 %v3181_v36 }
 0x389   : > { %3518 = vmatmul.mubr.bf16.vlgmr.msra.gmra.mxu0 %v3180_v18 }
 0x3c9   : > { %v4110_v19 = vpop.f32.mrf.mxu1 }
 0x3cb   : > { %v4111_v20 = vpop.f32.mrf.mxu1 }
 0x3cc   : > { %v4112_v21 = vadd.f32 %v4111_v20, %v4110_v19 }
 0x3cd   : > { %v4113_v22 = vpop.f32.mrf.mxu1 }
 0x3ce   : > { %v3480_v29 = vadd.f32 %v4112_v21, %v4035_v24 }
 0x3cf   : > { %v4114_v23 = vpop.f32.mrf.mxu1 }
 0x449   : > { %v4132_v25 = vpop.f32.mrf.mxu0 }
 0x44b   : > { %v4133_v26 = vpop.f32.mrf.mxu0 }
 0x44c   : > { %v4134_v34 = vadd.f32 %v4133_v26, %v4132_v25 }
 0x44d   : > { %v4135_v30 = vpop.f32.mrf.mxu0 }
 0x44e   : > { %v3520_v37 = vadd.f32 %v4134_v34, %v3480_v29 }
 0x44f   : > { %v4136_v38 = vpop.f32.mrf.mxu0 }
 0x450   : > { %3525 = vst [vmem:[%s484_s20] sm:$0xff] %v3520_v37 }
 0x451 PF: > { %s25_s18 = sadd.s32 1, %s4789_s18   ;;  %s5236_s21 = smov %s4941_s13 }
 0x452   : > { %p22_p5 = scmp.ge.s32.totalorder %s25_s18, 4   ;;  %s5237_s22 = sld [smem:[#allocation9_spill]] }
 0x453   : > { %s5238_s13 = smov %s4773_s14  ;;  %s5239_s14 = smov %s4777_s15 }
 0x454   : > { %s5240_s15 = smov %s5236_s21  ;;  %s5241_s16 = smov %s4785_s17 }
 0x455   :  { %24 = sbr.rel (!%p22_p5) target bundleno = 8 (0x8), region = 130 }
 0x458   : > { %s5242_s17 = smov %s5237_s22 }
 0x45a   :  { %3559 = vsyncpa [#allocation3], 1 }
 0x45b   :  { %3561 = vsyncpa [#allocation3 + $0x1], 1 }
 0x45c   :  { %3562 = vsyncpa [#allocation5], 1 }

</bundles_post_ra>
